<compile_context>
chip_gen: v5e
topology: v5e:2x2
jax: 0.10.0
libtpu: 0.0.40
codegen_flags: <defaults>
</compile_context>

<pallas_src>
import functools

import jax
import jax.numpy as jnp
from jax import lax
from jax.experimental import pallas as pl
from jax.experimental.pallas import tpu as pltpu


def _encoder_kernel(x2_ref, wih_ref, whh_ref, b_ref, idx_ref,
                    out_ref, ctx_ref, gx_ref, *, H, T, BP):
    # x2_ref : (T*BP, 2E)  time-major rows; row t*BP+b = [x[t,b] | x[T-1-t,b]]
    # wih_ref: (2E, 8H)    block input weights, columns [i_f i_b f_f f_b o_f o_b g_f g_b]
    # whh_ref: (2H, 8H)    block-diagonal recurrent weights, same column layout
    # b_ref  : (1, 8H)     folded biases, same column layout
    # idx_ref: (BP, 1)     last-real-token index per row (int32, clamped >= 0)
    # out_ref: (T*BP, 2H)  [h_fwd | h_bwd] per (t, b) row
    # ctx_ref: (BP, 2H)    real context
    # gx_ref : (T*BP, 8H)  scratch: hoisted, time-aligned input projection
    H2, H6, H8 = 2 * H, 6 * H, 8 * H

    # ---- hoisted input projection: ONE MXU matmul covers both directions, all steps ----
    gx_ref[...] = (jnp.dot(x2_ref[...], wih_ref[...],
                           preferred_element_type=jnp.float32) + b_ref[...])

    whh = whh_ref[...]                      # (2H, 8H)
    idx_v = idx_ref[...]                    # (BP, 1) int32

    zeros2 = jnp.zeros((BP, H2), jnp.float32)
    zeros1 = jnp.zeros((BP, H), jnp.float32)

    # ---- fused bidirectional recurrence: one matmul + 3 EUP pushes per step ----
    def body(s, carry):
        h2, c2, ctx_f, ctx_b = carry        # h2/c2: (BP, 2H) = [fwd | bwd]
        tb = T - 1 - s                      # backward-direction timestep

        row_f = pl.multiple_of(s * BP, BP)  # 8-sublane aligned row offsets
        row_b = pl.multiple_of(tb * BP, BP)

        # single fused recurrent matmul for both directions (8H = 256-wide output)
        gates = gx_ref[pl.ds(row_f, BP), :] + jnp.dot(
            h2, whh, preferred_element_type=jnp.float32)        # (BP, 8H)

        # fused cell math: sigmoid slab (6H) via one tanh, gate tanh (2H), tanh(c) (2H)
        sig = 0.5 * (jnp.tanh(0.5 * gates[:, 0:H6]) + 1.0)
        i2 = sig[:, 0:H2]
        f2 = sig[:, H2:2 * H2]
        o2 = sig[:, 2 * H2:3 * H2]
        g2 = jnp.tanh(gates[:, H6:H8])
        c2 = f2 * c2 + i2 * g2
        h2 = o2 * jnp.tanh(c2)                                   # (BP, 2H) = [h_f | h_b]

        # write h directly into the bidirectional output slab (no scratch / concat)
        out_ref[pl.ds(row_f, BP), 0:H] = h2[:, 0:H]
        out_ref[pl.ds(row_b, BP), H:H2] = h2[:, H:H2]

        # in-loop real-context capture (replaces post-hoc per-row gather)
        ctx_f = jnp.where(s == idx_v, h2[:, 0:H], ctx_f)
        ctx_b = jnp.where(tb == idx_v, h2[:, H:H2], ctx_b)
        return (h2, c2, ctx_f, ctx_b)

    carry = (zeros2, zeros2, zeros1, zeros1)
    unroll = True if T <= 16 else 8         # bounded unroll avoids vreg spills at large T
    carry = lax.fori_loop(0, T, body, carry, unroll=unroll)
    _, _, ctx_f, ctx_b = carry

    # single 2H-lane store for the context
    ctx_ref[...] = jnp.concatenate([ctx_f, ctx_b], axis=1)


def _split_gates(w, H):
    """Split last axis (4H, PyTorch order [i | f | g | o]) into the four gate blocks."""
    return (w[..., 0:H], w[..., H:2 * H], w[..., 2 * H:3 * H], w[..., 3 * H:4 * H])


def _build_blocks(params, H, E):
    """Build block weights with fused column layout [i_f i_b | f_f f_b | o_f o_b | g_f g_b]."""
    i_f, f_f, g_f, o_f = _split_gates(params["w_ih_f"].T, H)            # (E, H) each
    i_b, f_b, g_b, o_b = _split_gates(params["w_ih_b"].T, H)
    ui_f, uf_f, ug_f, uo_f = _split_gates(params["w_hh_f"].T, H)        # (H, H) each
    ui_b, uf_b, ug_b, uo_b = _split_gates(params["w_hh_b"].T, H)
    bi_f, bf_f, bg_f, bo_f = _split_gates((params["b_ih_f"] + params["b_hh_f"])[None, :], H)
    bi_b, bf_b, bg_b, bo_b = _split_gates((params["b_ih_b"] + params["b_hh_b"])[None, :], H)

    zE = jnp.zeros((E, H), jnp.float32)
    zH = jnp.zeros((H, H), jnp.float32)

    wih_blk = jnp.concatenate([
        jnp.concatenate([i_f, zE, f_f, zE, o_f, zE, g_f, zE], axis=1),   # x[t]      rows
        jnp.concatenate([zE, i_b, zE, f_b, zE, o_b, zE, g_b], axis=1),   # x[T-1-t]  rows
    ], axis=0).astype(jnp.float32)                                       # (2E, 8H)
    whh_blk = jnp.concatenate([
        jnp.concatenate([ui_f, zH, uf_f, zH, uo_f, zH, ug_f, zH], axis=1),   # h_f rows
        jnp.concatenate([zH, ui_b, zH, uf_b, zH, uo_b, zH, ug_b], axis=1),   # h_b rows
    ], axis=0).astype(jnp.float32)                                       # (2H, 8H)
    b_blk = jnp.concatenate(
        [bi_f, bi_b, bf_f, bf_b, bo_f, bo_b, bg_f, bg_b], axis=1).astype(jnp.float32)  # (1, 8H)
    return wih_blk, whh_blk, b_blk


def encoder_forward(tokens, input_masking, params):
    """tokens: (B,T) int32, input_masking: (B,T) int32 (0 = real token).
    Returns (output (B,T,2H), real_context (B,1,2H)) matching the PyTorch Encoder."""
    emb = params["embedding"]
    H = params["w_hh_f"].shape[1]
    E = emb.shape[1]
    B, T = tokens.shape
    BP = ((B + 7) // 8) * 8                 # pad batch to 8 sublanes for aligned row tiles

    # glue: embedding lookup + real-length computation + time-major layout
    embedded = jnp.take(emb, tokens, axis=0).astype(jnp.float32)        # (B, T, E)
    x_tm = jnp.swapaxes(embedded, 0, 1)                                  # (T, B, E)
    x_tm = jnp.pad(x_tm, ((0, 0), (0, BP - B), (0, 0)))                  # (T, BP, E)
    # x2[t] = [x[t] | x[T-1-t]]: both directions' inputs time-aligned for the fused loop.
    x2 = jnp.concatenate([x_tm, x_tm[::-1]], axis=-1).reshape(T * BP, 2 * E)

    idx = jnp.sum((input_masking == 0).astype(jnp.int32), axis=1) - 1
    # NOTE: fully-padded rows clamp to t=0 (the PyTorch reference would index -1);
    # documented semantics choice for degenerate inputs.
    idx = jnp.maximum(idx, 0).astype(jnp.int32)
    idx = jnp.pad(idx, (0, BP - B)).reshape(BP, 1)

    wih_blk, whh_blk, b_blk = _build_blocks(params, H, E)

    out_flat, ctx = pl.pallas_call(
        functools.partial(_encoder_kernel, H=H, T=T, BP=BP),
        out_shape=(jax.ShapeDtypeStruct((T * BP, 2 * H), jnp.float32),
                   jax.ShapeDtypeStruct((BP, 2 * H), jnp.float32)),
        in_specs=[pl.BlockSpec(memory_space=pltpu.MemorySpace.VMEM)] * 5,
        out_specs=(pl.BlockSpec(memory_space=pltpu.MemorySpace.VMEM),
                   pl.BlockSpec(memory_space=pltpu.MemorySpace.VMEM)),
        scratch_shapes=[pltpu.VMEM((T * BP, 8 * H), jnp.float32)],
    )(x2, wih_blk, whh_blk, b_blk, idx)

    out = jnp.swapaxes(out_flat.reshape(T, BP, 2 * H)[:, :B], 0, 1)      # (B, T, 2H)
    return out, ctx[:B, None, :]                                         # (B, 1, 2H)


def _init_params(key, input_size, embedding_size, hidden_size):
    ks = jax.random.split(key, 9)
    k = 1.0 / jnp.sqrt(hidden_size)
    H4 = 4 * hidden_size
    u = lambda kk, shape, lim: jax.random.uniform(kk, shape, jnp.float32, -lim, lim)
    return {
        "embedding": u(ks[0], (input_size, embedding_size), 0.1),
        "w_ih_f": u(ks[1], (H4, embedding_size), k),
        "w_hh_f": u(ks[2], (H4, hidden_size), k),
        "b_ih_f": u(ks[3], (H4,), k),
        "b_hh_f": u(ks[4], (H4,), k),
        "w_ih_b": u(ks[5], (H4, embedding_size), k),
        "w_hh_b": u(ks[6], (H4, hidden_size), k),
        "b_ih_b": u(ks[7], (H4,), k),
        "b_hh_b": u(ks[8], (H4,), k),
    }


def _reference(tokens, input_masking, params):
    """Pure-JAX reference of the PyTorch forward pass (for a sanity check)."""
    emb = params["embedding"]
    H = params["w_hh_f"].shape[1]
    x = jnp.take(emb, tokens, axis=0).astype(jnp.float32)
    B, T, _ = x.shape

    def run_dir(wih, whh, bih, bhh, reverse):
        b = bih + bhh

        def step(carry, x_t):
            h, c = carry
            gates = x_t @ wih.T + h @ whh.T + b
            i = jax.nn.sigmoid(gates[:, 0 * H:1 * H])
            f = jax.nn.sigmoid(gates[:, 1 * H:2 * H])
            g = jnp.tanh(gates[:, 2 * H:3 * H])
            o = jax.nn.sigmoid(gates[:, 3 * H:4 * H])
            c = f * c + i * g
            h = o * jnp.tanh(c)
            return (h, c), h

        xs = jnp.swapaxes(x, 0, 1)  # (T,B,E)
        _, hs = lax.scan(step, (jnp.zeros((B, H)), jnp.zeros((B, H))), xs, reverse=reverse)
        return jnp.swapaxes(hs, 0, 1)  # (B,T,H)

    out_f = run_dir(params["w_ih_f"], params["w_hh_f"], params["b_ih_f"], params["b_hh_f"], False)
    out_b = run_dir(params["w_ih_b"], params["w_hh_b"], params["b_ih_b"], params["b_hh_b"], True)
    out = jnp.concatenate([out_f, out_b], axis=-1)
    idx = jnp.sum((input_masking == 0).astype(jnp.int32), axis=1) - 1
    ctx = jnp.take_along_axis(out, idx[:, None, None], axis=1)  # (B,1,2H)
    return out, ctx


if __name__ == "__main__":
    B, T = 2, 8
    input_size, embedding_size, hidden_size = 50, 16, 32

    key = jax.random.PRNGKey(0)
    k_param, k_tok = jax.random.split(key)
    params = _init_params(k_param, input_size, embedding_size, hidden_size)

    tokens = jax.random.randint(k_tok, (B, T), 0, input_size, dtype=jnp.int32)
    # masking: 0 = real token, 1 = PAD (real lengths 5 and 8)
    lengths = jnp.array([5, 8], dtype=jnp.int32)
    input_masking = (jnp.arange(T)[None, :] >= lengths[:, None]).astype(jnp.int32)

    out, ctx = encoder_forward(tokens, input_masking, params)
    out = jax.block_until_ready(out)
    ctx = jax.block_until_ready(ctx)

    ref_out, ref_ctx = _reference(tokens, input_masking, params)
    assert out.shape == (B, T, 2 * hidden_size)
    assert ctx.shape == (B, 1, 2 * hidden_size)
    assert jnp.allclose(out, ref_out, atol=1e-3, rtol=1e-3)
    assert jnp.allclose(ctx, ref_ctx, atol=1e-3, rtol=1e-3)

    print("KERNEL_OK")
</pallas_src>

<mosaic_0001>
module attributes {stable_mosaic.version = 11 : i64} {
  func.func @_encoder_kernel(%arg0: memref<64x32xf32, #tpu.memory_space<vmem>>, %arg1: memref<32x256xf32, #tpu.memory_space<vmem>>, %arg2: memref<64x256xf32, #tpu.memory_space<vmem>>, %arg3: memref<1x256xf32, #tpu.memory_space<vmem>>, %arg4: memref<8x1xi32, #tpu.memory_space<vmem>>, %arg5: memref<64x64xf32, #tpu.memory_space<vmem>>, %arg6: memref<8x64xf32, #tpu.memory_space<vmem>>, %arg7: memref<64x256xf32, #tpu.memory_space<vmem>>) attributes {dimension_semantics = [], scalar_prefetch = 0 : i64, scratch_operands = 1 : i64, tpu.core_type = #tpu.core_type<tc>} {
    %c0 = arith.constant 0 : index
    %c0_0 = arith.constant 0 : index
    %0 = vector.load %arg0[%c0, %c0_0] : memref<64x32xf32, #tpu.memory_space<vmem>>, vector<64x32xf32>
    %c0_1 = arith.constant 0 : index
    %c0_2 = arith.constant 0 : index
    %1 = vector.load %arg1[%c0_1, %c0_2] : memref<32x256xf32, #tpu.memory_space<vmem>>, vector<32x256xf32>
    %cst = arith.constant dense<0.000000e+00> : vector<64x256xf32>
    %2 = tpu.matmul %0, %1, %cst {dimension_numbers = #tpu.dot_dimension_numbers<[1], [0], [0], [1], [0, 0, 1, 1], [], []>} : vector<64x32xf32>, vector<32x256xf32>, vector<64x256xf32> -> vector<64x256xf32>
    %c0_3 = arith.constant 0 : index
    %c0_4 = arith.constant 0 : index
    %3 = vector.load %arg3[%c0_3, %c0_4] : memref<1x256xf32, #tpu.memory_space<vmem>>, vector<1x256xf32>
    %4 = vector.broadcast %3 : vector<1x256xf32> to vector<64x256xf32>
    %5 = arith.addf %2, %4 : vector<64x256xf32>
    %c0_5 = arith.constant 0 : index
    %c0_6 = arith.constant 0 : index
    %6 = vector.load %arg7[%c0_5, %c0_6] : memref<64x256xf32, #tpu.memory_space<vmem>>, vector<64x256xf32>
    tpu.vector_store %arg7[%c0_5, %c0_6], %5 {strides = array<i32>} : memref<64x256xf32, #tpu.memory_space<vmem>>, vector<64x256xf32>,
    %c0_7 = arith.constant 0 : index
    %c0_8 = arith.constant 0 : index
    %7 = vector.load %arg2[%c0_7, %c0_8] : memref<64x256xf32, #tpu.memory_space<vmem>>, vector<64x256xf32>
    %c0_9 = arith.constant 0 : index
    %c0_10 = arith.constant 0 : index
    %8 = vector.load %arg4[%c0_9, %c0_10] : memref<8x1xi32, #tpu.memory_space<vmem>>, vector<8x1xi32>
    %cst_11 = arith.constant 0.000000e+00 : f32
    %9 = vector.broadcast %cst_11 : f32 to vector<8x64xf32>
    %cst_12 = arith.constant 0.000000e+00 : f32
    %10 = vector.broadcast %cst_12 : f32 to vector<8x32xf32>
    %c0_i32 = arith.constant 0 : i32
    %c7_i32 = arith.constant 7 : i32
    %11 = arith.subi %c7_i32, %c0_i32 : i32
    %c8_i32 = arith.constant 8 : i32
    %12 = arith.muli %c0_i32, %c8_i32 : i32
    %13 = tpu.assume_multiple %12, 8 : i32
    %c8_i32_13 = arith.constant 8 : i32
    %14 = arith.muli %11, %c8_i32_13 : i32
    %15 = tpu.assume_multiple %14, 8 : i32
    %16 = arith.index_cast %13 : i32 to index
    %c0_14 = arith.constant 0 : index
    %17 = vector.load %arg7[%16, %c0_14] : memref<64x256xf32, #tpu.memory_space<vmem>>, vector<8x256xf32>
    %cst_15 = arith.constant dense<0.000000e+00> : vector<8x256xf32>
    %18 = tpu.matmul %9, %7, %cst_15 {dimension_numbers = #tpu.dot_dimension_numbers<[1], [0], [0], [1], [0, 0, 1, 1], [], []>} : vector<8x64xf32>, vector<64x256xf32>, vector<8x256xf32> -> vector<8x256xf32>
    %19 = arith.addf %17, %18 : vector<8x256xf32>
    %20 = vector.extract_strided_slice %19 {offsets = [0, 0], sizes = [8, 192], strides = [1, 1]} : vector<8x256xf32> to vector<8x192xf32>
    %cst_16 = arith.constant 5.000000e-01 : f32
    %21 = vector.broadcast %cst_16 : f32 to vector<8x192xf32>
    %22 = arith.mulf %21, %20 : vector<8x192xf32>
    %23 = math.tanh %22 : vector<8x192xf32>
    %cst_17 = arith.constant 1.000000e+00 : f32
    %24 = vector.broadcast %cst_17 : f32 to vector<8x192xf32>
    %25 = arith.addf %23, %24 : vector<8x192xf32>
    %cst_18 = arith.constant 5.000000e-01 : f32
    %26 = vector.broadcast %cst_18 : f32 to vector<8x192xf32>
    %27 = arith.mulf %26, %25 : vector<8x192xf32>
    %28 = vector.extract_strided_slice %27 {offsets = [0, 0], sizes = [8, 64], strides = [1, 1]} : vector<8x192xf32> to vector<8x64xf32>
    %29 = vector.extract_strided_slice %27 {offsets = [0, 64], sizes = [8, 64], strides = [1, 1]} : vector<8x192xf32> to vector<8x64xf32>
    %30 = vector.extract_strided_slice %27 {offsets = [0, 128], sizes = [8, 64], strides = [1, 1]} : vector<8x192xf32> to vector<8x64xf32>
    %31 = vector.extract_strided_slice %19 {offsets = [0, 192], sizes = [8, 64], strides = [1, 1]} : vector<8x256xf32> to vector<8x64xf32>
    %32 = math.tanh %31 : vector<8x64xf32>
    %33 = arith.mulf %29, %9 : vector<8x64xf32>
    %34 = arith.mulf %28, %32 : vector<8x64xf32>
    %35 = arith.addf %33, %34 : vector<8x64xf32>
    %36 = math.tanh %35 : vector<8x64xf32>
    %37 = arith.mulf %30, %36 : vector<8x64xf32>
    %38 = vector.extract_strided_slice %37 {offsets = [0, 0], sizes = [8, 32], strides = [1, 1]} : vector<8x64xf32> to vector<8x32xf32>
    %39 = arith.index_cast %13 : i32 to index
    %c0_19 = arith.constant 0 : index
    %40 = vector.load %arg5[%39, %c0_19] : memref<64x64xf32, #tpu.memory_space<vmem>>, vector<8x32xf32>
    tpu.vector_store %arg5[%39, %c0_19], %38 {strides = array<i32>} : memref<64x64xf32, #tpu.memory_space<vmem>>, vector<8x32xf32>,
    %41 = vector.extract_strided_slice %37 {offsets = [0, 32], sizes = [8, 32], strides = [1, 1]} : vector<8x64xf32> to vector<8x32xf32>
    %42 = arith.index_cast %15 : i32 to index
    %c32 = arith.constant 32 : index
    %43 = vector.load %arg5[%42, %c32] : memref<64x64xf32, #tpu.memory_space<vmem>>, vector<8x32xf32>
    tpu.vector_store %arg5[%42, %c32], %41 {strides = array<i32>} : memref<64x64xf32, #tpu.memory_space<vmem>>, vector<8x32xf32>,
    %44 = vector.broadcast %c0_i32 : i32 to vector<8x1xi32>
    %45 = arith.cmpi eq, %44, %8 : vector<8x1xi32>
    %46 = vector.extract_strided_slice %37 {offsets = [0, 0], sizes = [8, 32], strides = [1, 1]} : vector<8x64xf32> to vector<8x32xf32>
    %47 = vector.shape_cast %45 : vector<8x1xi1> to vector<8x1xi1>
    %48 = vector.broadcast %47 : vector<8x1xi1> to vector<8x32xi1>
    %49 = arith.select %48, %46, %10 : vector<8x32xi1>, vector<8x32xf32>
    %50 = vector.broadcast %11 : i32 to vector<8x1xi32>
    %51 = arith.cmpi eq, %50, %8 : vector<8x1xi32>
    %52 = vector.extract_strided_slice %37 {offsets = [0, 32], sizes = [8, 32], strides = [1, 1]} : vector<8x64xf32> to vector<8x32xf32>
    %53 = vector.shape_cast %51 : vector<8x1xi1> to vector<8x1xi1>
    %54 = vector.broadcast %53 : vector<8x1xi1> to vector<8x32xi1>
    %55 = arith.select %54, %52, %10 : vector<8x32xi1>, vector<8x32xf32>
    %c1_i32 = arith.constant 1 : i32
    %c7_i32_20 = arith.constant 7 : i32
    %56 = arith.subi %c7_i32_20, %c1_i32 : i32
    %c8_i32_21 = arith.constant 8 : i32
    %57 = arith.muli %c1_i32, %c8_i32_21 : i32
    %58 = tpu.assume_multiple %57, 8 : i32
    %c8_i32_22 = arith.constant 8 : i32
    %59 = arith.muli %56, %c8_i32_22 : i32
    %60 = tpu.assume_multiple %59, 8 : i32
    %61 = arith.index_cast %58 : i32 to index
    %c0_23 = arith.constant 0 : index
    %62 = vector.load %arg7[%61, %c0_23] : memref<64x256xf32, #tpu.memory_space<vmem>>, vector<8x256xf32>
    %cst_24 = arith.constant dense<0.000000e+00> : vector<8x256xf32>
    %63 = tpu.matmul %37, %7, %cst_24 {dimension_numbers = #tpu.dot_dimension_numbers<[1], [0], [0], [1], [0, 0, 1, 1], [], []>} : vector<8x64xf32>, vector<64x256xf32>, vector<8x256xf32> -> vector<8x256xf32>
    %64 = arith.addf %62, %63 : vector<8x256xf32>
    %65 = vector.extract_strided_slice %64 {offsets = [0, 0], sizes = [8, 192], strides = [1, 1]} : vector<8x256xf32> to vector<8x192xf32>
    %cst_25 = arith.constant 5.000000e-01 : f32
    %66 = vector.broadcast %cst_25 : f32 to vector<8x192xf32>
    %67 = arith.mulf %66, %65 : vector<8x192xf32>
    %68 = math.tanh %67 : vector<8x192xf32>
    %cst_26 = arith.constant 1.000000e+00 : f32
    %69 = vector.broadcast %cst_26 : f32 to vector<8x192xf32>
    %70 = arith.addf %68, %69 : vector<8x192xf32>
    %cst_27 = arith.constant 5.000000e-01 : f32
    %71 = vector.broadcast %cst_27 : f32 to vector<8x192xf32>
    %72 = arith.mulf %71, %70 : vector<8x192xf32>
    %73 = vector.extract_strided_slice %72 {offsets = [0, 0], sizes = [8, 64], strides = [1, 1]} : vector<8x192xf32> to vector<8x64xf32>
    %74 = vector.extract_strided_slice %72 {offsets = [0, 64], sizes = [8, 64], strides = [1, 1]} : vector<8x192xf32> to vector<8x64xf32>
    %75 = vector.extract_strided_slice %72 {offsets = [0, 128], sizes = [8, 64], strides = [1, 1]} : vector<8x192xf32> to vector<8x64xf32>
    %76 = vector.extract_strided_slice %64 {offsets = [0, 192], sizes = [8, 64], strides = [1, 1]} : vector<8x256xf32> to vector<8x64xf32>
    %77 = math.tanh %76 : vector<8x64xf32>
    %78 = arith.mulf %74, %35 : vector<8x64xf32>
    %79 = arith.mulf %73, %77 : vector<8x64xf32>
    %80 = arith.addf %78, %79 : vector<8x64xf32>
    %81 = math.tanh %80 : vector<8x64xf32>
    %82 = arith.mulf %75, %81 : vector<8x64xf32>
    %83 = vector.extract_strided_slice %82 {offsets = [0, 0], sizes = [8, 32], strides = [1, 1]} : vector<8x64xf32> to vector<8x32xf32>
    %84 = arith.index_cast %58 : i32 to index
    %c0_28 = arith.constant 0 : index
    %85 = vector.load %arg5[%84, %c0_28] : memref<64x64xf32, #tpu.memory_space<vmem>>, vector<8x32xf32>
    tpu.vector_store %arg5[%84, %c0_28], %83 {strides = array<i32>} : memref<64x64xf32, #tpu.memory_space<vmem>>, vector<8x32xf32>,
    %86 = vector.extract_strided_slice %82 {offsets = [0, 32], sizes = [8, 32], strides = [1, 1]} : vector<8x64xf32> to vector<8x32xf32>
    %87 = arith.index_cast %60 : i32 to index
    %c32_29 = arith.constant 32 : index
    %88 = vector.load %arg5[%87, %c32_29] : memref<64x64xf32, #tpu.memory_space<vmem>>, vector<8x32xf32>
    tpu.vector_store %arg5[%87, %c32_29], %86 {strides = array<i32>} : memref<64x64xf32, #tpu.memory_space<vmem>>, vector<8x32xf32>,
    %89 = vector.broadcast %c1_i32 : i32 to vector<8x1xi32>
    %90 = arith.cmpi eq, %89, %8 : vector<8x1xi32>
    %91 = vector.extract_strided_slice %82 {offsets = [0, 0], sizes = [8, 32], strides = [1, 1]} : vector<8x64xf32> to vector<8x32xf32>
    %92 = vector.shape_cast %90 : vector<8x1xi1> to vector<8x1xi1>
    %93 = vector.broadcast %92 : vector<8x1xi1> to vector<8x32xi1>
    %94 = arith.select %93, %91, %49 : vector<8x32xi1>, vector<8x32xf32>
    %95 = vector.broadcast %56 : i32 to vector<8x1xi32>
    %96 = arith.cmpi eq, %95, %8 : vector<8x1xi32>
    %97 = vector.extract_strided_slice %82 {offsets = [0, 32], sizes = [8, 32], strides = [1, 1]} : vector<8x64xf32> to vector<8x32xf32>
    %98 = vector.shape_cast %96 : vector<8x1xi1> to vector<8x1xi1>
    %99 = vector.broadcast %98 : vector<8x1xi1> to vector<8x32xi1>
    %100 = arith.select %99, %97, %55 : vector<8x32xi1>, vector<8x32xf32>
    %c2_i32 = arith.constant 2 : i32
    %c7_i32_30 = arith.constant 7 : i32
    %101 = arith.subi %c7_i32_30, %c2_i32 : i32
    %c8_i32_31 = arith.constant 8 : i32
    %102 = arith.muli %c2_i32, %c8_i32_31 : i32
    %103 = tpu.assume_multiple %102, 8 : i32
    %c8_i32_32 = arith.constant 8 : i32
    %104 = arith.muli %101, %c8_i32_32 : i32
    %105 = tpu.assume_multiple %104, 8 : i32
    %106 = arith.index_cast %103 : i32 to index
    %c0_33 = arith.constant 0 : index
    %107 = vector.load %arg7[%106, %c0_33] : memref<64x256xf32, #tpu.memory_space<vmem>>, vector<8x256xf32>
    %cst_34 = arith.constant dense<0.000000e+00> : vector<8x256xf32>
    %108 = tpu.matmul %82, %7, %cst_34 {dimension_numbers = #tpu.dot_dimension_numbers<[1], [0], [0], [1], [0, 0, 1, 1], [], []>} : vector<8x64xf32>, vector<64x256xf32>, vector<8x256xf32> -> vector<8x256xf32>
    %109 = arith.addf %107, %108 : vector<8x256xf32>
    %110 = vector.extract_strided_slice %109 {offsets = [0, 0], sizes = [8, 192], strides = [1, 1]} : vector<8x256xf32> to vector<8x192xf32>
    %cst_35 = arith.constant 5.000000e-01 : f32
    %111 = vector.broadcast %cst_35 : f32 to vector<8x192xf32>
    %112 = arith.mulf %111, %110 : vector<8x192xf32>
    %113 = math.tanh %112 : vector<8x192xf32>
    %cst_36 = arith.constant 1.000000e+00 : f32
    %114 = vector.broadcast %cst_36 : f32 to vector<8x192xf32>
    %115 = arith.addf %113, %114 : vector<8x192xf32>
    %cst_37 = arith.constant 5.000000e-01 : f32
    %116 = vector.broadcast %cst_37 : f32 to vector<8x192xf32>
    %117 = arith.mulf %116, %115 : vector<8x192xf32>
    %118 = vector.extract_strided_slice %117 {offsets = [0, 0], sizes = [8, 64], strides = [1, 1]} : vector<8x192xf32> to vector<8x64xf32>
    %119 = vector.extract_strided_slice %117 {offsets = [0, 64], sizes = [8, 64], strides = [1, 1]} : vector<8x192xf32> to vector<8x64xf32>
    %120 = vector.extract_strided_slice %117 {offsets = [0, 128], sizes = [8, 64], strides = [1, 1]} : vector<8x192xf32> to vector<8x64xf32>
    %121 = vector.extract_strided_slice %109 {offsets = [0, 192], sizes = [8, 64], strides = [1, 1]} : vector<8x256xf32> to vector<8x64xf32>
    %122 = math.tanh %121 : vector<8x64xf32>
    %123 = arith.mulf %119, %80 : vector<8x64xf32>
    %124 = arith.mulf %118, %122 : vector<8x64xf32>
    %125 = arith.addf %123, %124 : vector<8x64xf32>
    %126 = math.tanh %125 : vector<8x64xf32>
    %127 = arith.mulf %120, %126 : vector<8x64xf32>
    %128 = vector.extract_strided_slice %127 {offsets = [0, 0], sizes = [8, 32], strides = [1, 1]} : vector<8x64xf32> to vector<8x32xf32>
    %129 = arith.index_cast %103 : i32 to index
    %c0_38 = arith.constant 0 : index
    %130 = vector.load %arg5[%129, %c0_38] : memref<64x64xf32, #tpu.memory_space<vmem>>, vector<8x32xf32>
    tpu.vector_store %arg5[%129, %c0_38], %128 {strides = array<i32>} : memref<64x64xf32, #tpu.memory_space<vmem>>, vector<8x32xf32>,
    %131 = vector.extract_strided_slice %127 {offsets = [0, 32], sizes = [8, 32], strides = [1, 1]} : vector<8x64xf32> to vector<8x32xf32>
    %132 = arith.index_cast %105 : i32 to index
    %c32_39 = arith.constant 32 : index
    %133 = vector.load %arg5[%132, %c32_39] : memref<64x64xf32, #tpu.memory_space<vmem>>, vector<8x32xf32>
    tpu.vector_store %arg5[%132, %c32_39], %131 {strides = array<i32>} : memref<64x64xf32, #tpu.memory_space<vmem>>, vector<8x32xf32>,
    %134 = vector.broadcast %c2_i32 : i32 to vector<8x1xi32>
    %135 = arith.cmpi eq, %134, %8 : vector<8x1xi32>
    %136 = vector.extract_strided_slice %127 {offsets = [0, 0], sizes = [8, 32], strides = [1, 1]} : vector<8x64xf32> to vector<8x32xf32>
    %137 = vector.shape_cast %135 : vector<8x1xi1> to vector<8x1xi1>
    %138 = vector.broadcast %137 : vector<8x1xi1> to vector<8x32xi1>
    %139 = arith.select %138, %136, %94 : vector<8x32xi1>, vector<8x32xf32>
    %140 = vector.broadcast %101 : i32 to vector<8x1xi32>
    %141 = arith.cmpi eq, %140, %8 : vector<8x1xi32>
    %142 = vector.extract_strided_slice %127 {offsets = [0, 32], sizes = [8, 32], strides = [1, 1]} : vector<8x64xf32> to vector<8x32xf32>
    %143 = vector.shape_cast %141 : vector<8x1xi1> to vector<8x1xi1>
    %144 = vector.broadcast %143 : vector<8x1xi1> to vector<8x32xi1>
    %145 = arith.select %144, %142, %100 : vector<8x32xi1>, vector<8x32xf32>
    %c3_i32 = arith.constant 3 : i32
    %c7_i32_40 = arith.constant 7 : i32
    %146 = arith.subi %c7_i32_40, %c3_i32 : i32
    %c8_i32_41 = arith.constant 8 : i32
    %147 = arith.muli %c3_i32, %c8_i32_41 : i32
    %148 = tpu.assume_multiple %147, 8 : i32
    %c8_i32_42 = arith.constant 8 : i32
    %149 = arith.muli %146, %c8_i32_42 : i32
    %150 = tpu.assume_multiple %149, 8 : i32
    %151 = arith.index_cast %148 : i32 to index
    %c0_43 = arith.constant 0 : index
    %152 = vector.load %arg7[%151, %c0_43] : memref<64x256xf32, #tpu.memory_space<vmem>>, vector<8x256xf32>
    %cst_44 = arith.constant dense<0.000000e+00> : vector<8x256xf32>
    %153 = tpu.matmul %127, %7, %cst_44 {dimension_numbers = #tpu.dot_dimension_numbers<[1], [0], [0], [1], [0, 0, 1, 1], [], []>} : vector<8x64xf32>, vector<64x256xf32>, vector<8x256xf32> -> vector<8x256xf32>
    %154 = arith.addf %152, %153 : vector<8x256xf32>
    %155 = vector.extract_strided_slice %154 {offsets = [0, 0], sizes = [8, 192], strides = [1, 1]} : vector<8x256xf32> to vector<8x192xf32>
    %cst_45 = arith.constant 5.000000e-01 : f32
    %156 = vector.broadcast %cst_45 : f32 to vector<8x192xf32>
    %157 = arith.mulf %156, %155 : vector<8x192xf32>
    %158 = math.tanh %157 : vector<8x192xf32>
    %cst_46 = arith.constant 1.000000e+00 : f32
    %159 = vector.broadcast %cst_46 : f32 to vector<8x192xf32>
    %160 = arith.addf %158, %159 : vector<8x192xf32>
    %cst_47 = arith.constant 5.000000e-01 : f32
    %161 = vector.broadcast %cst_47 : f32 to vector<8x192xf32>
    %162 = arith.mulf %161, %160 : vector<8x192xf32>
    %163 = vector.extract_strided_slice %162 {offsets = [0, 0], sizes = [8, 64], strides = [1, 1]} : vector<8x192xf32> to vector<8x64xf32>
    %164 = vector.extract_strided_slice %162 {offsets = [0, 64], sizes = [8, 64], strides = [1, 1]} : vector<8x192xf32> to vector<8x64xf32>
    %165 = vector.extract_strided_slice %162 {offsets = [0, 128], sizes = [8, 64], strides = [1, 1]} : vector<8x192xf32> to vector<8x64xf32>
    %166 = vector.extract_strided_slice %154 {offsets = [0, 192], sizes = [8, 64], strides = [1, 1]} : vector<8x256xf32> to vector<8x64xf32>
    %167 = math.tanh %166 : vector<8x64xf32>
    %168 = arith.mulf %164, %125 : vector<8x64xf32>
    %169 = arith.mulf %163, %167 : vector<8x64xf32>
    %170 = arith.addf %168, %169 : vector<8x64xf32>
    %171 = math.tanh %170 : vector<8x64xf32>
    %172 = arith.mulf %165, %171 : vector<8x64xf32>
    %173 = vector.extract_strided_slice %172 {offsets = [0, 0], sizes = [8, 32], strides = [1, 1]} : vector<8x64xf32> to vector<8x32xf32>
    %174 = arith.index_cast %148 : i32 to index
    %c0_48 = arith.constant 0 : index
    %175 = vector.load %arg5[%174, %c0_48] : memref<64x64xf32, #tpu.memory_space<vmem>>, vector<8x32xf32>
    tpu.vector_store %arg5[%174, %c0_48], %173 {strides = array<i32>} : memref<64x64xf32, #tpu.memory_space<vmem>>, vector<8x32xf32>,
    %176 = vector.extract_strided_slice %172 {offsets = [0, 32], sizes = [8, 32], strides = [1, 1]} : vector<8x64xf32> to vector<8x32xf32>
    %177 = arith.index_cast %150 : i32 to index
    %c32_49 = arith.constant 32 : index
    %178 = vector.load %arg5[%177, %c32_49] : memref<64x64xf32, #tpu.memory_space<vmem>>, vector<8x32xf32>
    tpu.vector_store %arg5[%177, %c32_49], %176 {strides = array<i32>} : memref<64x64xf32, #tpu.memory_space<vmem>>, vector<8x32xf32>,
    %179 = vector.broadcast %c3_i32 : i32 to vector<8x1xi32>
    %180 = arith.cmpi eq, %179, %8 : vector<8x1xi32>
    %181 = vector.extract_strided_slice %172 {offsets = [0, 0], sizes = [8, 32], strides = [1, 1]} : vector<8x64xf32> to vector<8x32xf32>
    %182 = vector.shape_cast %180 : vector<8x1xi1> to vector<8x1xi1>
    %183 = vector.broadcast %182 : vector<8x1xi1> to vector<8x32xi1>
    %184 = arith.select %183, %181, %139 : vector<8x32xi1>, vector<8x32xf32>
    %185 = vector.broadcast %146 : i32 to vector<8x1xi32>
    %186 = arith.cmpi eq, %185, %8 : vector<8x1xi32>
    %187 = vector.extract_strided_slice %172 {offsets = [0, 32], sizes = [8, 32], strides = [1, 1]} : vector<8x64xf32> to vector<8x32xf32>
    %188 = vector.shape_cast %186 : vector<8x1xi1> to vector<8x1xi1>
    %189 = vector.broadcast %188 : vector<8x1xi1> to vector<8x32xi1>
    %190 = arith.select %189, %187, %145 : vector<8x32xi1>, vector<8x32xf32>
    %c4_i32 = arith.constant 4 : i32
    %c7_i32_50 = arith.constant 7 : i32
    %191 = arith.subi %c7_i32_50, %c4_i32 : i32
    %c8_i32_51 = arith.constant 8 : i32
    %192 = arith.muli %c4_i32, %c8_i32_51 : i32
    %193 = tpu.assume_multiple %192, 8 : i32
    %c8_i32_52 = arith.constant 8 : i32
    %194 = arith.muli %191, %c8_i32_52 : i32
    %195 = tpu.assume_multiple %194, 8 : i32
    %196 = arith.index_cast %193 : i32 to index
    %c0_53 = arith.constant 0 : index
    %197 = vector.load %arg7[%196, %c0_53] : memref<64x256xf32, #tpu.memory_space<vmem>>, vector<8x256xf32>
    %cst_54 = arith.constant dense<0.000000e+00> : vector<8x256xf32>
    %198 = tpu.matmul %172, %7, %cst_54 {dimension_numbers = #tpu.dot_dimension_numbers<[1], [0], [0], [1], [0, 0, 1, 1], [], []>} : vector<8x64xf32>, vector<64x256xf32>, vector<8x256xf32> -> vector<8x256xf32>
    %199 = arith.addf %197, %198 : vector<8x256xf32>
    %200 = vector.extract_strided_slice %199 {offsets = [0, 0], sizes = [8, 192], strides = [1, 1]} : vector<8x256xf32> to vector<8x192xf32>
    %cst_55 = arith.constant 5.000000e-01 : f32
    %201 = vector.broadcast %cst_55 : f32 to vector<8x192xf32>
    %202 = arith.mulf %201, %200 : vector<8x192xf32>
    %203 = math.tanh %202 : vector<8x192xf32>
    %cst_56 = arith.constant 1.000000e+00 : f32
    %204 = vector.broadcast %cst_56 : f32 to vector<8x192xf32>
    %205 = arith.addf %203, %204 : vector<8x192xf32>
    %cst_57 = arith.constant 5.000000e-01 : f32
    %206 = vector.broadcast %cst_57 : f32 to vector<8x192xf32>
    %207 = arith.mulf %206, %205 : vector<8x192xf32>
    %208 = vector.extract_strided_slice %207 {offsets = [0, 0], sizes = [8, 64], strides = [1, 1]} : vector<8x192xf32> to vector<8x64xf32>
    %209 = vector.extract_strided_slice %207 {offsets = [0, 64], sizes = [8, 64], strides = [1, 1]} : vector<8x192xf32> to vector<8x64xf32>
    %210 = vector.extract_strided_slice %207 {offsets = [0, 128], sizes = [8, 64], strides = [1, 1]} : vector<8x192xf32> to vector<8x64xf32>
    %211 = vector.extract_strided_slice %199 {offsets = [0, 192], sizes = [8, 64], strides = [1, 1]} : vector<8x256xf32> to vector<8x64xf32>
    %212 = math.tanh %211 : vector<8x64xf32>
    %213 = arith.mulf %209, %170 : vector<8x64xf32>
    %214 = arith.mulf %208, %212 : vector<8x64xf32>
    %215 = arith.addf %213, %214 : vector<8x64xf32>
    %216 = math.tanh %215 : vector<8x64xf32>
    %217 = arith.mulf %210, %216 : vector<8x64xf32>
    %218 = vector.extract_strided_slice %217 {offsets = [0, 0], sizes = [8, 32], strides = [1, 1]} : vector<8x64xf32> to vector<8x32xf32>
    %219 = arith.index_cast %193 : i32 to index
    %c0_58 = arith.constant 0 : index
    %220 = vector.load %arg5[%219, %c0_58] : memref<64x64xf32, #tpu.memory_space<vmem>>, vector<8x32xf32>
    tpu.vector_store %arg5[%219, %c0_58], %218 {strides = array<i32>} : memref<64x64xf32, #tpu.memory_space<vmem>>, vector<8x32xf32>,
    %221 = vector.extract_strided_slice %217 {offsets = [0, 32], sizes = [8, 32], strides = [1, 1]} : vector<8x64xf32> to vector<8x32xf32>
    %222 = arith.index_cast %195 : i32 to index
    %c32_59 = arith.constant 32 : index
    %223 = vector.load %arg5[%222, %c32_59] : memref<64x64xf32, #tpu.memory_space<vmem>>, vector<8x32xf32>
    tpu.vector_store %arg5[%222, %c32_59], %221 {strides = array<i32>} : memref<64x64xf32, #tpu.memory_space<vmem>>, vector<8x32xf32>,
    %224 = vector.broadcast %c4_i32 : i32 to vector<8x1xi32>
    %225 = arith.cmpi eq, %224, %8 : vector<8x1xi32>
    %226 = vector.extract_strided_slice %217 {offsets = [0, 0], sizes = [8, 32], strides = [1, 1]} : vector<8x64xf32> to vector<8x32xf32>
    %227 = vector.shape_cast %225 : vector<8x1xi1> to vector<8x1xi1>
    %228 = vector.broadcast %227 : vector<8x1xi1> to vector<8x32xi1>
    %229 = arith.select %228, %226, %184 : vector<8x32xi1>, vector<8x32xf32>
    %230 = vector.broadcast %191 : i32 to vector<8x1xi32>
    %231 = arith.cmpi eq, %230, %8 : vector<8x1xi32>
    %232 = vector.extract_strided_slice %217 {offsets = [0, 32], sizes = [8, 32], strides = [1, 1]} : vector<8x64xf32> to vector<8x32xf32>
    %233 = vector.shape_cast %231 : vector<8x1xi1> to vector<8x1xi1>
    %234 = vector.broadcast %233 : vector<8x1xi1> to vector<8x32xi1>
    %235 = arith.select %234, %232, %190 : vector<8x32xi1>, vector<8x32xf32>
    %c5_i32 = arith.constant 5 : i32
    %c7_i32_60 = arith.constant 7 : i32
    %236 = arith.subi %c7_i32_60, %c5_i32 : i32
    %c8_i32_61 = arith.constant 8 : i32
    %237 = arith.muli %c5_i32, %c8_i32_61 : i32
    %238 = tpu.assume_multiple %237, 8 : i32
    %c8_i32_62 = arith.constant 8 : i32
    %239 = arith.muli %236, %c8_i32_62 : i32
    %240 = tpu.assume_multiple %239, 8 : i32
    %241 = arith.index_cast %238 : i32 to index
    %c0_63 = arith.constant 0 : index
    %242 = vector.load %arg7[%241, %c0_63] : memref<64x256xf32, #tpu.memory_space<vmem>>, vector<8x256xf32>
    %cst_64 = arith.constant dense<0.000000e+00> : vector<8x256xf32>
    %243 = tpu.matmul %217, %7, %cst_64 {dimension_numbers = #tpu.dot_dimension_numbers<[1], [0], [0], [1], [0, 0, 1, 1], [], []>} : vector<8x64xf32>, vector<64x256xf32>, vector<8x256xf32> -> vector<8x256xf32>
    %244 = arith.addf %242, %243 : vector<8x256xf32>
    %245 = vector.extract_strided_slice %244 {offsets = [0, 0], sizes = [8, 192], strides = [1, 1]} : vector<8x256xf32> to vector<8x192xf32>
    %cst_65 = arith.constant 5.000000e-01 : f32
    %246 = vector.broadcast %cst_65 : f32 to vector<8x192xf32>
    %247 = arith.mulf %246, %245 : vector<8x192xf32>
    %248 = math.tanh %247 : vector<8x192xf32>
    %cst_66 = arith.constant 1.000000e+00 : f32
    %249 = vector.broadcast %cst_66 : f32 to vector<8x192xf32>
    %250 = arith.addf %248, %249 : vector<8x192xf32>
    %cst_67 = arith.constant 5.000000e-01 : f32
    %251 = vector.broadcast %cst_67 : f32 to vector<8x192xf32>
    %252 = arith.mulf %251, %250 : vector<8x192xf32>
    %253 = vector.extract_strided_slice %252 {offsets = [0, 0], sizes = [8, 64], strides = [1, 1]} : vector<8x192xf32> to vector<8x64xf32>
    %254 = vector.extract_strided_slice %252 {offsets = [0, 64], sizes = [8, 64], strides = [1, 1]} : vector<8x192xf32> to vector<8x64xf32>
    %255 = vector.extract_strided_slice %252 {offsets = [0, 128], sizes = [8, 64], strides = [1, 1]} : vector<8x192xf32> to vector<8x64xf32>
    %256 = vector.extract_strided_slice %244 {offsets = [0, 192], sizes = [8, 64], strides = [1, 1]} : vector<8x256xf32> to vector<8x64xf32>
    %257 = math.tanh %256 : vector<8x64xf32>
    %258 = arith.mulf %254, %215 : vector<8x64xf32>
    %259 = arith.mulf %253, %257 : vector<8x64xf32>
    %260 = arith.addf %258, %259 : vector<8x64xf32>
    %261 = math.tanh %260 : vector<8x64xf32>
    %262 = arith.mulf %255, %261 : vector<8x64xf32>
    %263 = vector.extract_strided_slice %262 {offsets = [0, 0], sizes = [8, 32], strides = [1, 1]} : vector<8x64xf32> to vector<8x32xf32>
    %264 = arith.index_cast %238 : i32 to index
    %c0_68 = arith.constant 0 : index
    %265 = vector.load %arg5[%264, %c0_68] : memref<64x64xf32, #tpu.memory_space<vmem>>, vector<8x32xf32>
    tpu.vector_store %arg5[%264, %c0_68], %263 {strides = array<i32>} : memref<64x64xf32, #tpu.memory_space<vmem>>, vector<8x32xf32>,
    %266 = vector.extract_strided_slice %262 {offsets = [0, 32], sizes = [8, 32], strides = [1, 1]} : vector<8x64xf32> to vector<8x32xf32>
    %267 = arith.index_cast %240 : i32 to index
    %c32_69 = arith.constant 32 : index
    %268 = vector.load %arg5[%267, %c32_69] : memref<64x64xf32, #tpu.memory_space<vmem>>, vector<8x32xf32>
    tpu.vector_store %arg5[%267, %c32_69], %266 {strides = array<i32>} : memref<64x64xf32, #tpu.memory_space<vmem>>, vector<8x32xf32>,
    %269 = vector.broadcast %c5_i32 : i32 to vector<8x1xi32>
    %270 = arith.cmpi eq, %269, %8 : vector<8x1xi32>
    %271 = vector.extract_strided_slice %262 {offsets = [0, 0], sizes = [8, 32], strides = [1, 1]} : vector<8x64xf32> to vector<8x32xf32>
    %272 = vector.shape_cast %270 : vector<8x1xi1> to vector<8x1xi1>
    %273 = vector.broadcast %272 : vector<8x1xi1> to vector<8x32xi1>
    %274 = arith.select %273, %271, %229 : vector<8x32xi1>, vector<8x32xf32>
    %275 = vector.broadcast %236 : i32 to vector<8x1xi32>
    %276 = arith.cmpi eq, %275, %8 : vector<8x1xi32>
    %277 = vector.extract_strided_slice %262 {offsets = [0, 32], sizes = [8, 32], strides = [1, 1]} : vector<8x64xf32> to vector<8x32xf32>
    %278 = vector.shape_cast %276 : vector<8x1xi1> to vector<8x1xi1>
    %279 = vector.broadcast %278 : vector<8x1xi1> to vector<8x32xi1>
    %280 = arith.select %279, %277, %235 : vector<8x32xi1>, vector<8x32xf32>
    %c6_i32 = arith.constant 6 : i32
    %c7_i32_70 = arith.constant 7 : i32
    %281 = arith.subi %c7_i32_70, %c6_i32 : i32
    %c8_i32_71 = arith.constant 8 : i32
    %282 = arith.muli %c6_i32, %c8_i32_71 : i32
    %283 = tpu.assume_multiple %282, 8 : i32
    %c8_i32_72 = arith.constant 8 : i32
    %284 = arith.muli %281, %c8_i32_72 : i32
    %285 = tpu.assume_multiple %284, 8 : i32
    %286 = arith.index_cast %283 : i32 to index
    %c0_73 = arith.constant 0 : index
    %287 = vector.load %arg7[%286, %c0_73] : memref<64x256xf32, #tpu.memory_space<vmem>>, vector<8x256xf32>
    %cst_74 = arith.constant dense<0.000000e+00> : vector<8x256xf32>
    %288 = tpu.matmul %262, %7, %cst_74 {dimension_numbers = #tpu.dot_dimension_numbers<[1], [0], [0], [1], [0, 0, 1, 1], [], []>} : vector<8x64xf32>, vector<64x256xf32>, vector<8x256xf32> -> vector<8x256xf32>
    %289 = arith.addf %287, %288 : vector<8x256xf32>
    %290 = vector.extract_strided_slice %289 {offsets = [0, 0], sizes = [8, 192], strides = [1, 1]} : vector<8x256xf32> to vector<8x192xf32>
    %cst_75 = arith.constant 5.000000e-01 : f32
    %291 = vector.broadcast %cst_75 : f32 to vector<8x192xf32>
    %292 = arith.mulf %291, %290 : vector<8x192xf32>
    %293 = math.tanh %292 : vector<8x192xf32>
    %cst_76 = arith.constant 1.000000e+00 : f32
    %294 = vector.broadcast %cst_76 : f32 to vector<8x192xf32>
    %295 = arith.addf %293, %294 : vector<8x192xf32>
    %cst_77 = arith.constant 5.000000e-01 : f32
    %296 = vector.broadcast %cst_77 : f32 to vector<8x192xf32>
    %297 = arith.mulf %296, %295 : vector<8x192xf32>
    %298 = vector.extract_strided_slice %297 {offsets = [0, 0], sizes = [8, 64], strides = [1, 1]} : vector<8x192xf32> to vector<8x64xf32>
    %299 = vector.extract_strided_slice %297 {offsets = [0, 64], sizes = [8, 64], strides = [1, 1]} : vector<8x192xf32> to vector<8x64xf32>
    %300 = vector.extract_strided_slice %297 {offsets = [0, 128], sizes = [8, 64], strides = [1, 1]} : vector<8x192xf32> to vector<8x64xf32>
    %301 = vector.extract_strided_slice %289 {offsets = [0, 192], sizes = [8, 64], strides = [1, 1]} : vector<8x256xf32> to vector<8x64xf32>
    %302 = math.tanh %301 : vector<8x64xf32>
    %303 = arith.mulf %299, %260 : vector<8x64xf32>
    %304 = arith.mulf %298, %302 : vector<8x64xf32>
    %305 = arith.addf %303, %304 : vector<8x64xf32>
    %306 = math.tanh %305 : vector<8x64xf32>
    %307 = arith.mulf %300, %306 : vector<8x64xf32>
    %308 = vector.extract_strided_slice %307 {offsets = [0, 0], sizes = [8, 32], strides = [1, 1]} : vector<8x64xf32> to vector<8x32xf32>
    %309 = arith.index_cast %283 : i32 to index
    %c0_78 = arith.constant 0 : index
    %310 = vector.load %arg5[%309, %c0_78] : memref<64x64xf32, #tpu.memory_space<vmem>>, vector<8x32xf32>
    tpu.vector_store %arg5[%309, %c0_78], %308 {strides = array<i32>} : memref<64x64xf32, #tpu.memory_space<vmem>>, vector<8x32xf32>,
    %311 = vector.extract_strided_slice %307 {offsets = [0, 32], sizes = [8, 32], strides = [1, 1]} : vector<8x64xf32> to vector<8x32xf32>
    %312 = arith.index_cast %285 : i32 to index
    %c32_79 = arith.constant 32 : index
    %313 = vector.load %arg5[%312, %c32_79] : memref<64x64xf32, #tpu.memory_space<vmem>>, vector<8x32xf32>
    tpu.vector_store %arg5[%312, %c32_79], %311 {strides = array<i32>} : memref<64x64xf32, #tpu.memory_space<vmem>>, vector<8x32xf32>,
    %314 = vector.broadcast %c6_i32 : i32 to vector<8x1xi32>
    %315 = arith.cmpi eq, %314, %8 : vector<8x1xi32>
    %316 = vector.extract_strided_slice %307 {offsets = [0, 0], sizes = [8, 32], strides = [1, 1]} : vector<8x64xf32> to vector<8x32xf32>
    %317 = vector.shape_cast %315 : vector<8x1xi1> to vector<8x1xi1>
    %318 = vector.broadcast %317 : vector<8x1xi1> to vector<8x32xi1>
    %319 = arith.select %318, %316, %274 : vector<8x32xi1>, vector<8x32xf32>
    %320 = vector.broadcast %281 : i32 to vector<8x1xi32>
    %321 = arith.cmpi eq, %320, %8 : vector<8x1xi32>
    %322 = vector.extract_strided_slice %307 {offsets = [0, 32], sizes = [8, 32], strides = [1, 1]} : vector<8x64xf32> to vector<8x32xf32>
    %323 = vector.shape_cast %321 : vector<8x1xi1> to vector<8x1xi1>
    %324 = vector.broadcast %323 : vector<8x1xi1> to vector<8x32xi1>
    %325 = arith.select %324, %322, %280 : vector<8x32xi1>, vector<8x32xf32>
    %c7_i32_80 = arith.constant 7 : i32
    %c7_i32_81 = arith.constant 7 : i32
    %326 = arith.subi %c7_i32_81, %c7_i32_80 : i32
    %c8_i32_82 = arith.constant 8 : i32
    %327 = arith.muli %c7_i32_80, %c8_i32_82 : i32
    %328 = tpu.assume_multiple %327, 8 : i32
    %c8_i32_83 = arith.constant 8 : i32
    %329 = arith.muli %326, %c8_i32_83 : i32
    %330 = tpu.assume_multiple %329, 8 : i32
    %331 = arith.index_cast %328 : i32 to index
    %c0_84 = arith.constant 0 : index
    %332 = vector.load %arg7[%331, %c0_84] : memref<64x256xf32, #tpu.memory_space<vmem>>, vector<8x256xf32>
    %cst_85 = arith.constant dense<0.000000e+00> : vector<8x256xf32>
    %333 = tpu.matmul %307, %7, %cst_85 {dimension_numbers = #tpu.dot_dimension_numbers<[1], [0], [0], [1], [0, 0, 1, 1], [], []>} : vector<8x64xf32>, vector<64x256xf32>, vector<8x256xf32> -> vector<8x256xf32>
    %334 = arith.addf %332, %333 : vector<8x256xf32>
    %335 = vector.extract_strided_slice %334 {offsets = [0, 0], sizes = [8, 192], strides = [1, 1]} : vector<8x256xf32> to vector<8x192xf32>
    %cst_86 = arith.constant 5.000000e-01 : f32
    %336 = vector.broadcast %cst_86 : f32 to vector<8x192xf32>
    %337 = arith.mulf %336, %335 : vector<8x192xf32>
    %338 = math.tanh %337 : vector<8x192xf32>
    %cst_87 = arith.constant 1.000000e+00 : f32
    %339 = vector.broadcast %cst_87 : f32 to vector<8x192xf32>
    %340 = arith.addf %338, %339 : vector<8x192xf32>
    %cst_88 = arith.constant 5.000000e-01 : f32
    %341 = vector.broadcast %cst_88 : f32 to vector<8x192xf32>
    %342 = arith.mulf %341, %340 : vector<8x192xf32>
    %343 = vector.extract_strided_slice %342 {offsets = [0, 0], sizes = [8, 64], strides = [1, 1]} : vector<8x192xf32> to vector<8x64xf32>
    %344 = vector.extract_strided_slice %342 {offsets = [0, 64], sizes = [8, 64], strides = [1, 1]} : vector<8x192xf32> to vector<8x64xf32>
    %345 = vector.extract_strided_slice %342 {offsets = [0, 128], sizes = [8, 64], strides = [1, 1]} : vector<8x192xf32> to vector<8x64xf32>
    %346 = vector.extract_strided_slice %334 {offsets = [0, 192], sizes = [8, 64], strides = [1, 1]} : vector<8x256xf32> to vector<8x64xf32>
    %347 = math.tanh %346 : vector<8x64xf32>
    %348 = arith.mulf %344, %305 : vector<8x64xf32>
    %349 = arith.mulf %343, %347 : vector<8x64xf32>
    %350 = arith.addf %348, %349 : vector<8x64xf32>
    %351 = math.tanh %350 : vector<8x64xf32>
    %352 = arith.mulf %345, %351 : vector<8x64xf32>
    %353 = vector.extract_strided_slice %352 {offsets = [0, 0], sizes = [8, 32], strides = [1, 1]} : vector<8x64xf32> to vector<8x32xf32>
    %354 = arith.index_cast %328 : i32 to index
    %c0_89 = arith.constant 0 : index
    %355 = vector.load %arg5[%354, %c0_89] : memref<64x64xf32, #tpu.memory_space<vmem>>, vector<8x32xf32>
    tpu.vector_store %arg5[%354, %c0_89], %353 {strides = array<i32>} : memref<64x64xf32, #tpu.memory_space<vmem>>, vector<8x32xf32>,
    %356 = vector.extract_strided_slice %352 {offsets = [0, 32], sizes = [8, 32], strides = [1, 1]} : vector<8x64xf32> to vector<8x32xf32>
    %357 = arith.index_cast %330 : i32 to index
    %c32_90 = arith.constant 32 : index
    %358 = vector.load %arg5[%357, %c32_90] : memref<64x64xf32, #tpu.memory_space<vmem>>, vector<8x32xf32>
    tpu.vector_store %arg5[%357, %c32_90], %356 {strides = array<i32>} : memref<64x64xf32, #tpu.memory_space<vmem>>, vector<8x32xf32>,
    %359 = vector.broadcast %c7_i32_80 : i32 to vector<8x1xi32>
    %360 = arith.cmpi eq, %359, %8 : vector<8x1xi32>
    %361 = vector.extract_strided_slice %352 {offsets = [0, 0], sizes = [8, 32], strides = [1, 1]} : vector<8x64xf32> to vector<8x32xf32>
    %362 = vector.shape_cast %360 : vector<8x1xi1> to vector<8x1xi1>
    %363 = vector.broadcast %362 : vector<8x1xi1> to vector<8x32xi1>
    %364 = arith.select %363, %361, %319 : vector<8x32xi1>, vector<8x32xf32>
    %365 = vector.broadcast %326 : i32 to vector<8x1xi32>
    %366 = arith.cmpi eq, %365, %8 : vector<8x1xi32>
    %367 = vector.extract_strided_slice %352 {offsets = [0, 32], sizes = [8, 32], strides = [1, 1]} : vector<8x64xf32> to vector<8x32xf32>
    %368 = vector.shape_cast %366 : vector<8x1xi1> to vector<8x1xi1>
    %369 = vector.broadcast %368 : vector<8x1xi1> to vector<8x32xi1>
    %370 = arith.select %369, %367, %325 : vector<8x32xi1>, vector<8x32xf32>
    %c8_i32_91 = arith.constant 8 : i32
    %371 = tpu.concatenate %364, %370 in 1 : vector<8x32xf32>, vector<8x32xf32> -> vector<8x64xf32>
    %c0_92 = arith.constant 0 : index
    %c0_93 = arith.constant 0 : index
    %372 = vector.load %arg6[%c0_92, %c0_93] : memref<8x64xf32, #tpu.memory_space<vmem>>, vector<8x64xf32>
    tpu.vector_store %arg6[%c0_92, %c0_93], %371 {strides = array<i32>} : memref<8x64xf32, #tpu.memory_space<vmem>>, vector<8x64xf32>,
    return
  }
}

</mosaic_0001>

<bundles_post_ra>
// kernel: tpu_custom_call.1
= control target key start
LH: loop header
LB: loop body
LE: loop exit
PB: predicated region body
PF: predicated region fallthrough
CT: control target
= control target key end

     0   :  { %12 = vsyncpa [#allocation4], 0  ;;  %s1568_s0 = inlined_call_operand.vmem [shape: f32[64,32], index: 0, kind: input, shape index: {}]   ;;  %s1569_s1 = inlined_call_operand.vmem [shape: f32[32,256], index: 1, kind: input, shape index: {}]   ;;  %s1570_s2 = inlined_call_operand.hbm [shape: f32[64,256], index: 2, kind: input, shape index: {}]   ;;  %s1571_s3 = inlined_call_operand.vmem [shape: f32[1,256], index: 3, kind: input, shape index: {}]   ;;  %s1572_s4 = inlined_call_operand.vmem [shape: s32[8,1], index: 4, kind: input, shape index: {}]   ;;  %s1573_s5 = inlined_call_operand.hbm [shape: f32[64,64], index: 5, kind: output, shape index: {0}]   ;;  %s1574_s6 = inlined_call_operand.hbm [shape: f32[8,64], index: 6, kind: output, shape index: {1}]  }
   0x1   :  { %13 = vsyncpa [#allocation5], 0 }
   0x2   :  { %14 = vsyncpa [#allocation8], 0  ;;  %s23_s23 = sshll.u32 %s1570_s2, 4  ;;  %s1128_s24 = smov [#allocation3]   ;;  %s24_s23 = int_to_ptr.hbm [resolvable:$true] %s23_s23 }
   0x3   :  { %s25_s25 = sshll.u32 %s1128_s24, 4  ;;  %s1129_s26 = smov 256   ;;  %s26_s25 = int_to_ptr.vmem [resolvable:$true] %s25_s25 }
   0x4   :  { %s1130_s27 = smov 16  }
   0x5   :  { %31 = dma.hbm_to_vmem [thread:$0]  %s24_s23, 2048, %s26_s25, [#allocation4], %s1129_s26, %s1129_s26, %s1130_s27  }
   0x6   :  { %1122 = dma.done.wait [#allocation4], 2048  }
   0x7   :  { %1123 = vsyncadd [#allocation4], 4294965248  ;;  %v1176_v0 = vld [vmem:[#allocation3 + $0x78] sm:$0xff]  ;;  %v1178_v1 = vld [vmem:[#allocation3 + $0x68] sm:$0xff]  ;;  %vm62_vm0 = vcmask 261120   ;;  %v1131_v24 = vmov 0.0  }
   0x8   :  { %239 = vmatpush.msra.mxu3 %v1176_v0  ;;  %v1181_v2 = vld [vmem:[#allocation3 + $0x58] sm:$0xff]  ;;  %v53_v4 = vld [vmem:[%s1569_s1 + $0x28] sm:$0xff]  ;;  %v1195_v7 = vld [vmem:[#allocation3 + $0x70] sm:$0xff]  ;;  %s1132_s22 = smov 64   ;;  %vm207_vm1 = vcmask 523264   ;;  %vm281_vm2 = vcmask 523520  }
   0x9   :  { %v55_v3 = vld [vmem:[%s1569_s1 + $0x38] sm:$0xff]  ;;  %v1190_v5 = vld [vmem:[#allocation3 + $0x48] sm:$0xff]  ;;  %v1198_v8 = vld [vmem:[#allocation3 + $0x60] sm:$0xff]  ;;  %219 = vmatpush.msra.mxu2 %v1195_v7  ;;  %s907_s15 = sshll.u32 %s1573_s5, 4  ;;  %s1135_s16 = smov [#allocation7]   ;;  %s908_s15 = int_to_ptr.hbm [resolvable:$true] %s907_s15 }
   0xa   :  { %240 = vmatpush.msra.mxu3 %v1178_v1  ;;  %140 = vmatpush.msra.mxu1 %v55_v3  ;;  %v51_v6 = vld [vmem:[%s1569_s1 + $0x18] sm:$0xff]  ;;  %v49_v10 = vld [vmem:[%s1569_s1 + $0x8] sm:$0xff]  ;;  %v54_v11 = vld [vmem:[%s1569_s1 + $0x30] sm:$0xff]  ;;  %s919_s17 = sshll.u32 %s1135_s16, 4  ;;  %s921_s20 = sshll.u32 %s1574_s6, 4  ;;  %s920_s17 = int_to_ptr.vmem [resolvable:$true] %s919_s17  ;;  %s922_s20 = int_to_ptr.hbm [resolvable:$true] %s921_s20 }
   0xb   :  { %v1200_v9 = vld [vmem:[#allocation3 + $0x38] sm:$0xff]  ;;  %v40_v12 = vld [vmem:[%s1568_s0] sm:$0xff]  ;;  %v1213_v13 = vld [vmem:[#allocation3 + $0x50] sm:$0xff]  ;;  %220 = vmatpush.msra.mxu2 %v1198_v8  ;;  %99 = vmatpush.msra.mxu0 %v54_v11  ;;  %s1136_s5 = smov 128   ;;  %s1137_s6 = smov 8  }
   0xc   :  { %241 = vmatpush.msra.mxu3 %v1181_v2  ;;  %141 = vmatpush.msra.mxu1 %v53_v4  ;;  %v1215_v14 = vld [vmem:[#allocation3 + $0x28] sm:$0xff]  ;;  %v52_v15 = vld [vmem:[%s1569_s1 + $0x20] sm:$0xff]  ;;  %v1224_v17 = vld [vmem:[#allocation3 + $0x18] sm:$0xff] }
   0xd   :  { %v1222_v16 = vld [vmem:[#allocation3 + $0x40] sm:$0xff]  ;;  %221 = vmatpush.msra.mxu2 %v1213_v13  ;;  %v50_v18 = vld [vmem:[%s1569_s1 + $0x10] sm:$0xff]  ;;  %100 = vmatpush.msra.mxu0 %v52_v15  ;;  %v1234_v20 = vld [vmem:[#allocation3 + $0x8] sm:$0xff] }
   0xe   :  { %242 = vmatpush.msra.mxu3 %v1190_v5  ;;  %142 = vmatpush.msra.mxu1 %v51_v6  ;;  %v1232_v19 = vld [vmem:[#allocation3 + $0x30] sm:$0xff]  ;;  %v48_v21 = vld [vmem:[%s1569_s1] sm:$0xff]  ;;  %v41_v48 = vld [vmem:[%s1568_s0 + $0x8] sm:$0xff] }
   0xf   :  { %222 = vmatpush.msra.mxu2 %v1222_v16  ;;  %v1242_v22 = vld [vmem:[#allocation3 + $0x20] sm:$0xff]  ;;  %101 = vmatpush.msra.mxu0 %v50_v18  ;;  %v1247_v23 = vld [vmem:[#allocation3 + $0x10] sm:$0xff] }
  0x10   :  { %243 = vmatpush.msra.mxu3 %v1200_v9  ;;  %143 = vmatpush.msra.mxu1 %v49_v10  ;;  %v1250_v25 = vld [vmem:[#allocation3] sm:$0xff] }
  0x11   :  { %951 = vmatmul.msk.f32.vlgmr.msra.gmra.mxu1 %vm62_vm0, %v40_v12  ;;  %223 = vmatpush.msra.mxu2 %v1232_v19  ;;  %v56_v26 = vld [vmem:[%s1571_s3] sm:$0x3] }
  0x12   :  { %244 = vmatpush.msra.mxu3 %v1215_v14  ;;  %615 = vmatpush.msrb.mxu1 %v1176_v0  ;;  %v1320_v27 = vperm.slane %v56_v26, 1  ;;  %v1324_v33 = vperm.slane %v56_v26, 0  ;;  %v42_v26 = vld [vmem:[%s1568_s0 + $0x10] sm:$0xff] }
  0x13   :  { %102 = vmatpush.msra.mxu0 %v48_v21  ;;  %224 = vmatpush.msra.mxu2 %v1242_v22 }
  0x14   :  { %245 = vmatpush.msra.mxu3 %v1224_v17  ;;  %616 = vmatpush.msrb.mxu1 %v1178_v1 }
  0x15   :  { %943 = vmatmul.msk.f32.vlgmr.msra.gmra.mxu0 %vm62_vm0, %v40_v12  ;;  %225 = vmatpush.msra.mxu2 %v1247_v23 }
  0x16   :  { %246 = vmatpush.msra.mxu3 %v1234_v20  ;;  %617 = vmatpush.msrb.mxu1 %v1181_v2 }
  0x17   :  { %247 = vmatmul.f32.vlgmr.msra.gmra.mxu3 %v1131_v24  ;;  %595 = vmatpush.msrb.mxu0 %v1195_v7 }
  0x18   :  { %333 = vmatpush.msrb.mxu3 %v1176_v0  ;;  %226 = vmatpush.msra.mxu2 %v1250_v25 }
  0x19   :  { %618 = vmatpush.msrb.mxu1 %v1190_v5  ;;  %227 = vmatmul.f32.vlgmr.msra.gmra.mxu2 %v1131_v24 }
  0x1a   :  { %334 = vmatpush.msrb.mxu3 %v1178_v1  ;;  %313 = vmatpush.msrb.mxu2 %v1195_v7 }
  0x1b   :  { %619 = vmatpush.msrb.mxu1 %v1200_v9  ;;  %596 = vmatpush.msrb.mxu0 %v1198_v8 }
  0x1c   :  { %335 = vmatpush.msrb.mxu3 %v1181_v2  ;;  %314 = vmatpush.msrb.mxu2 %v1198_v8 }
  0x1d   :  { %620 = vmatpush.msrb.mxu1 %v1215_v14  ;;  %597 = vmatpush.msrb.mxu0 %v1213_v13 }
  0x1e   :  { %336 = vmatpush.msrb.mxu3 %v1190_v5  ;;  %315 = vmatpush.msrb.mxu2 %v1213_v13 }
  0x1f   :  { %621 = vmatpush.msrb.mxu1 %v1224_v17  ;;  %598 = vmatpush.msrb.mxu0 %v1222_v16 }
  0x20   :  { %337 = vmatpush.msrb.mxu3 %v1200_v9  ;;  %316 = vmatpush.msrb.mxu2 %v1222_v16 }
  0x21   :  { %622 = vmatpush.msrb.mxu1 %v1234_v20  ;;  %599 = vmatpush.msrb.mxu0 %v1232_v19 }
  0x22   :  { %338 = vmatpush.msrb.mxu3 %v1215_v14  ;;  %317 = vmatpush.msrb.mxu2 %v1232_v19 }
  0x23   :  { %775 = vmatpush.msra.mxu1 %v1176_v0  ;;  %600 = vmatpush.msrb.mxu0 %v1242_v22 }
  0x24   :  { %339 = vmatpush.msrb.mxu3 %v1224_v17  ;;  %318 = vmatpush.msrb.mxu2 %v1242_v22 }
  0x25   :  { %601 = vmatpush.msrb.mxu0 %v1247_v23  ;;  %776 = vmatpush.msra.mxu1 %v1178_v1 }
  0x26   :  { %340 = vmatpush.msrb.mxu3 %v1234_v20  ;;  %319 = vmatpush.msrb.mxu2 %v1247_v23 }
  0x27   :  { %602 = vmatpush.msrb.mxu0 %v1250_v25  ;;  %777 = vmatpush.msra.mxu1 %v1181_v2 }
  0x28   :  { %427 = vmatpush.msra.mxu3 %v1176_v0  ;;  %320 = vmatpush.msrb.mxu2 %v1250_v25 }
  0x29   :  { %755 = vmatpush.msra.mxu0 %v1195_v7  ;;  %778 = vmatpush.msra.mxu1 %v1190_v5 }
  0x2a   :  { %428 = vmatpush.msra.mxu3 %v1178_v1  ;;  %407 = vmatpush.msra.mxu2 %v1195_v7 }
  0x2b   :  { %756 = vmatpush.msra.mxu0 %v1198_v8  ;;  %779 = vmatpush.msra.mxu1 %v1200_v9 }
  0x2c   :  { %429 = vmatpush.msra.mxu3 %v1181_v2  ;;  %408 = vmatpush.msra.mxu2 %v1198_v8 }
  0x2d   :  { %757 = vmatpush.msra.mxu0 %v1213_v13  ;;  %780 = vmatpush.msra.mxu1 %v1215_v14 }
  0x2e   :  { %430 = vmatpush.msra.mxu3 %v1190_v5  ;;  %409 = vmatpush.msra.mxu2 %v1213_v13 }
  0x2f   :  { %758 = vmatpush.msra.mxu0 %v1222_v16  ;;  %781 = vmatpush.msra.mxu1 %v1224_v17 }
  0x30   :  { %431 = vmatpush.msra.mxu3 %v1200_v9  ;;  %410 = vmatpush.msra.mxu2 %v1222_v16 }
  0x31   :  { %759 = vmatpush.msra.mxu0 %v1232_v19  ;;  %782 = vmatpush.msra.mxu1 %v1234_v20 }
  0x32   :  { %432 = vmatpush.msra.mxu3 %v1215_v14  ;;  %411 = vmatpush.msra.mxu2 %v1232_v19 }
  0x33   :  { %760 = vmatpush.msra.mxu0 %v1242_v22  ;;  %952 = vmatmul.msk.f32.gmra.mxu1 %vm62_vm0, %v41_v48 }
  0x34   :  { %433 = vmatpush.msra.mxu3 %v1224_v17  ;;  %412 = vmatpush.msra.mxu2 %v1242_v22 }
  0x35   :  { %761 = vmatpush.msra.mxu0 %v1247_v23 }
  0x36   :  { %434 = vmatpush.msra.mxu3 %v1234_v20  ;;  %413 = vmatpush.msra.mxu2 %v1247_v23 }
  0x37   :  { %762 = vmatpush.msra.mxu0 %v1250_v25 }
  0x38   :  { %414 = vmatpush.msra.mxu2 %v1250_v25  ;;  %944 = vmatmul.msk.f32.gmra.mxu0 %vm62_vm0, %v41_v48 }
  0x3b   :  { %953 = vmatmul.msk.f32.gmra.mxu1 %vm62_vm0, %v42_v26 }
  0x40   :  { %945 = vmatmul.msk.f32.gmra.mxu0 %vm62_vm0, %v42_v26 }
  0x8e   :  { %v145_v28 = vpop.f32.mrf.mxu1 }
  0x8f   :  { %v146_v29 = vadd.f32 %v145_v28, %v1320_v27 }
  0x92   :  { %v104_v34 = vpop.f32.mrf.mxu0 }
  0x93   :  { %v105_v35 = vadd.f32 %v104_v34, %v1324_v33 }
  0x9a   :  { %v248_v30 = vpop.f32.mrf.mxu3 }
  0x9b   :  { %v252_v31 = vadd.f32 %v248_v30, %v146_v29 }
  0x9c   :  { %v228_v36 = vpop.f32.mrf.mxu2 }
  0x9d   :  { %986 = vtanh.f32 %v252_v31  ;;  %v251_v37 = vadd.f32 %v228_v36, %v105_v35  ;;  %v254_v49 = vmul.f32 0.5, %v252_v31 }
  0x9f   :  { %v253_v38 = vmul.f32 0.5, %v251_v37 }
  0xa1   :  { %988 = vtanh.f32 %v253_v38 }
  0xa3   :  { %v987_v32 = vpop.eup %986 }
  0xa4   :  { %264 = vrot.lane.b32.xlu0 %v987_v32, %s1132_s22 }
  0xa7   :  { %v989_v39 = vpop.eup %988 }
  0xa8   :  { %v257_v40 = vadd.f32 1.0, %v989_v39 }
  0xaa   :  { %v259_v41 = vmul.f32 0.5, %v257_v40 }
  0xac   :  { %v262_v44 = vmul.f32 0.0, %v259_v41 }
  0xb0   :  { %v148_v55 = vpop.f32.mrf.mxu1 }
  0xb1   :  { %v149_v56 = vadd.f32 %v148_v55, %v1320_v27  ;;  %v43_v55 = vld [vmem:[%s1568_s0 + $0x18] sm:$0xff] }
  0xb2   :  { %946 = vmatmul.msk.f32.gmra.mxu0 %vm62_vm0, %v43_v55  ;;  %954 = vmatmul.msk.f32.gmra.mxu1 %vm62_vm0, %v43_v55 }
  0xb5   :  { %v107_v60 = vpop.f32.mrf.mxu0 }
  0xb6   :  { %v108_v61 = vadd.f32 %v107_v60, %v1324_v33 }
  0xb8   :  { %v151_v35 = vpop.f32.mrf.mxu1 }
  0xb9   :  { %v152_v36 = vadd.f32 %v151_v35, %v1320_v27 }
  0xbd   :  { %v110_v40 = vpop.f32.mrf.mxu0 }
 0x116   :  { %v265_v42 = vpop.permute.xlu0 %264 }
 0x117   :  { %v267_v43 = vmul.f32 %v265_v42, %v259_v41  ;;  %v111_v41 = vadd.f32 %v110_v40, %v1324_v33 }
 0x119   :  { %269 = vrot.lane.b32.xlu0 %v267_v43, %s1132_s22 }
 0x18b   :  { %v270_v45 = vpop.permute.xlu0 %269 }
 0x18c   :  { %v272_v46 = vadd.f32 %v270_v45, %v262_v44 }
 0x18e   :  { %990 = vtanh.f32 %v272_v46 }
 0x18f   :  { %992 = vtanh.f32 %v254_v49 }
 0x194   :  { %v991_v47 = vpop.eup %990 }
 0x195   :  { %275 = vrot.lane.b32.xlu1 %v991_v47, %s1132_s22  ;;  %v993_v50 = vpop.eup %992 }
 0x196   :  { %v258_v51 = vadd.f32 1.0, %v993_v50 }
 0x198   :  { %v260_v52 = vmul.f32 0.5, %v258_v51 }
 0x207   :  { %v276_v53 = vpop.permute.xlu1 %275 }
 0x208   :  { %v1334_v54 = vmul.f32 %v276_v53, %v260_v52 }
 0x20a   :  { %279 = vst.msk [vmem:[#allocation6] sm:$0xff] %vm62_vm0, %v1334_v54  ;;  %959 = vmatmul.msk.f32.vlgmr.msrb.gmra.mxu2 %vm207_vm1, %v1334_v54  ;;  %960 = vmatmul.msk.f32.vlgmr.msrb.gmra.mxu3 %vm207_vm1, %v1334_v54 }
 0x20b   :  { %282 = vst.msk [vmem:[#allocation6 + $0x38] sm:$0xff] %vm281_vm2, %v1334_v54  ;;  %501 = vmatpush.msrb.mxu2 %v1195_v7  ;;  %521 = vmatpush.msrb.mxu3 %v1176_v0 }
 0x20d   :  { %502 = vmatpush.msrb.mxu2 %v1198_v8  ;;  %522 = vmatpush.msrb.mxu3 %v1178_v1 }
 0x20f   :  { %503 = vmatpush.msrb.mxu2 %v1213_v13  ;;  %523 = vmatpush.msrb.mxu3 %v1181_v2 }
 0x211   :  { %504 = vmatpush.msrb.mxu2 %v1222_v16  ;;  %524 = vmatpush.msrb.mxu3 %v1190_v5 }
 0x213   :  { %505 = vmatpush.msrb.mxu2 %v1232_v19  ;;  %525 = vmatpush.msrb.mxu3 %v1200_v9 }
 0x215   :  { %506 = vmatpush.msrb.mxu2 %v1242_v22  ;;  %526 = vmatpush.msrb.mxu3 %v1215_v14 }
 0x217   :  { %507 = vmatpush.msrb.mxu2 %v1247_v23  ;;  %527 = vmatpush.msrb.mxu3 %v1224_v17 }
 0x219   :  { %508 = vmatpush.msrb.mxu2 %v1250_v25  ;;  %528 = vmatpush.msrb.mxu3 %v1234_v20 }
 0x28d   :  { %v342_v57 = vpop.f32.mrf.mxu3  ;;  %v322_v62 = vpop.f32.mrf.mxu2 }
 0x28e   :  { %v346_v58 = vadd.f32 %v342_v57, %v149_v56  ;;  %v345_v63 = vadd.f32 %v322_v62, %v108_v61  ;;  %v45_v62 = vld [vmem:[%s1568_s0 + $0x28] sm:$0xff] }
 0x290   :  { %994 = vtanh.f32 %v346_v58  ;;  %v347_v3 = vmul.f32 0.5, %v345_v63  ;;  %v348_v28 = vmul.f32 0.5, %v346_v58  ;;  %v46_v63 = vld [vmem:[%s1568_s0 + $0x30] sm:$0xff] }
 0x292   :  { %996 = vtanh.f32 %v347_v3 }
 0x296   :  { %v995_v59 = vpop.eup %994 }
 0x297   :  { %358 = vrot.lane.b32.xlu1 %v995_v59, %s1132_s22 }
 0x298   :  { %v997_v4 = vpop.eup %996 }
 0x299   :  { %v351_v6 = vadd.f32 1.0, %v997_v4 }
 0x29b   :  { %v353_v10 = vmul.f32 0.5, %v351_v6  ;;  %v47_v6 = vld [vmem:[%s1568_s0 + $0x38] sm:$0xff] }
 0x29d   :  { %v356_v15 = vmul.f32 %v353_v10, %v272_v46 }
 0x309   :  { %v359_v11 = vpop.permute.xlu1 %358 }
 0x30a   :  { %v361_v12 = vmul.f32 %v359_v11, %v353_v10 }
 0x30c   :  { %363 = vrot.lane.b32.xlu2 %v361_v12, %s1132_s22 }
 0x366   :  { %v364_v18 = vpop.permute.xlu2 %363 }
 0x367   :  { %v366_v21 = vadd.f32 %v364_v18, %v356_v15 }
 0x369   :  { %998 = vtanh.f32 %v366_v21 }
 0x36a   :  { %1000 = vtanh.f32 %v348_v28 }
 0x36f   :  { %v999_v24 = vpop.eup %998 }
 0x370   :  { %369 = vrot.lane.b32.xlu2 %v999_v24, %s1132_s22  ;;  %v1001_v29 = vpop.eup %1000 }
 0x371   :  { %v352_v30 = vadd.f32 1.0, %v1001_v29 }
 0x373   :  { %v354_v31 = vmul.f32 0.5, %v352_v30 }
 0x3ca   :  { %v370_v32 = vpop.permute.xlu2 %369 }
 0x3cb   :  { %v1370_v34 = vmul.f32 %v370_v32, %v354_v31 }
 0x3cd   :  { %374 = vst.msk [vmem:[#allocation6 + $0x8] sm:$0xff] %vm62_vm0, %v1370_v34  ;;  %961 = vmatmul.msk.f32.vlgmr.msra.gmra.mxu2 %vm207_vm1, %v1370_v34  ;;  %962 = vmatmul.msk.f32.vlgmr.msra.gmra.mxu3 %vm207_vm1, %v1370_v34 }
 0x3ce   :  { %376 = vst.msk [vmem:[#allocation6 + $0x30] sm:$0xff] %vm281_vm2, %v1370_v34  ;;  %675 = vmatpush.msra.mxu2 %v1195_v7  ;;  %695 = vmatpush.msra.mxu3 %v1176_v0 }
 0x3d0   :  { %676 = vmatpush.msra.mxu2 %v1198_v8  ;;  %696 = vmatpush.msra.mxu3 %v1178_v1 }
 0x3d2   :  { %677 = vmatpush.msra.mxu2 %v1213_v13  ;;  %697 = vmatpush.msra.mxu3 %v1181_v2 }
 0x3d4   :  { %678 = vmatpush.msra.mxu2 %v1222_v16  ;;  %698 = vmatpush.msra.mxu3 %v1190_v5 }
 0x3d6   :  { %679 = vmatpush.msra.mxu2 %v1232_v19  ;;  %699 = vmatpush.msra.mxu3 %v1200_v9 }
 0x3d8   :  { %680 = vmatpush.msra.mxu2 %v1242_v22  ;;  %700 = vmatpush.msra.mxu3 %v1215_v14 }
 0x3da   :  { %681 = vmatpush.msra.mxu2 %v1247_v23  ;;  %701 = vmatpush.msra.mxu3 %v1224_v17 }
 0x3dc   :  { %682 = vmatpush.msra.mxu2 %v1250_v25  ;;  %702 = vmatpush.msra.mxu3 %v1234_v20 }
 0x450   :  { %v436_v37 = vpop.f32.mrf.mxu3  ;;  %v416_v42 = vpop.f32.mrf.mxu2 }
 0x451   :  { %v440_v38 = vadd.f32 %v436_v37, %v152_v36  ;;  %v439_v43 = vadd.f32 %v416_v42, %v111_v41 }
 0x453   :  { %1002 = vtanh.f32 %v440_v38  ;;  %v441_v44 = vmul.f32 0.5, %v439_v43  ;;  %v442_v56 = vmul.f32 0.5, %v440_v38 }
 0x455   :  { %1004 = vtanh.f32 %v441_v44 }
 0x459   :  { %v1003_v39 = vpop.eup %1002 }
 0x45a   :  { %452 = vrot.lane.b32.xlu0 %v1003_v39, %s1132_s22 }
 0x45b   :  { %v1005_v45 = vpop.eup %1004 }
 0x45c   :  { %v445_v46 = vadd.f32 1.0, %v1005_v45 }
 0x45e   :  { %v447_v47 = vmul.f32 0.5, %v445_v46 }
 0x460   :  { %v450_v50 = vmul.f32 %v447_v47, %v366_v21 }
 0x4cc   :  { %v453_v48 = vpop.permute.xlu0 %452 }
 0x4cd   :  { %v455_v49 = vmul.f32 %v453_v48, %v447_v47 }
 0x4cf   :  { %457 = vrot.lane.b32.xlu1 %v455_v49, %s1132_s22 }
 0x541   :  { %v458_v51 = vpop.permute.xlu1 %457 }
 0x542   :  { %v460_v52 = vadd.f32 %v458_v51, %v450_v50 }
 0x544   :  { %1006 = vtanh.f32 %v460_v52 }
 0x545   :  { %1008 = vtanh.f32 %v442_v56 }
 0x54a   :  { %v1007_v53 = vpop.eup %1006 }
 0x54b   :  { %463 = vrot.lane.b32.xlu2 %v1007_v53, %s1132_s22  ;;  %v1009_v57 = vpop.eup %1008 }
 0x54c   :  { %v446_v58 = vadd.f32 1.0, %v1009_v57 }
 0x54e   :  { %v448_v59 = vmul.f32 0.5, %v446_v58 }
 0x5a5   :  { %v464_v60 = vpop.permute.xlu2 %463 }
 0x5a6   :  { %v1406_v61 = vmul.f32 %v464_v60, %v448_v59 }
 0x5a8   :  { %468 = vst.msk [vmem:[#allocation6 + $0x10] sm:$0xff] %vm62_vm0, %v1406_v61  ;;  %963 = vmatmul.msk.f32.vlgmr.msrb.gmra.mxu2 %vm207_vm1, %v1406_v61  ;;  %964 = vmatmul.msk.f32.vlgmr.msrb.gmra.mxu3 %vm207_vm1, %v1406_v61 }
 0x5a9   :  { %470 = vst.msk [vmem:[#allocation6 + $0x28] sm:$0xff] %vm281_vm2, %v1406_v61  ;;  %835 = vmatpush.msrb.mxu2 %v1195_v7  ;;  %855 = vmatpush.msrb.mxu3 %v1176_v0  ;;  %v154_v0 = vpop.f32.mrf.mxu1 }
 0x5ab   :  { %836 = vmatpush.msrb.mxu2 %v1198_v8  ;;  %856 = vmatpush.msrb.mxu3 %v1178_v1  ;;  %v155_v1 = vadd.f32 %v154_v0, %v1320_v27  ;;  %v113_v8 = vpop.f32.mrf.mxu0 }
 0x5ad   :  { %837 = vmatpush.msrb.mxu2 %v1213_v13  ;;  %857 = vmatpush.msrb.mxu3 %v1181_v2 }
 0x5af   :  { %838 = vmatpush.msrb.mxu2 %v1222_v16  ;;  %858 = vmatpush.msrb.mxu3 %v1190_v5 }
 0x5b1   :  { %839 = vmatpush.msrb.mxu2 %v1232_v19  ;;  %859 = vmatpush.msrb.mxu3 %v1200_v9  ;;  %v114_v9 = vadd.f32 %v113_v8, %v1324_v33 }
 0x5b3   :  { %840 = vmatpush.msrb.mxu2 %v1242_v22  ;;  %860 = vmatpush.msrb.mxu3 %v1215_v14 }
 0x5b5   :  { %841 = vmatpush.msrb.mxu2 %v1247_v23  ;;  %861 = vmatpush.msrb.mxu3 %v1224_v17 }
 0x5b7   :  { %842 = vmatpush.msrb.mxu2 %v1250_v25  ;;  %862 = vmatpush.msrb.mxu3 %v1234_v20  ;;  %v44_v25 = vld [vmem:[%s1568_s0 + $0x20] sm:$0xff] }
 0x5b8   :  { %947 = vmatmul.msk.f32.gmra.mxu0 %vm62_vm0, %v44_v25  ;;  %955 = vmatmul.msk.f32.gmra.mxu1 %vm62_vm0, %v44_v25 }
 0x5c0   :  { %948 = vmatmul.msk.f32.gmra.mxu0 %vm62_vm0, %v45_v62  ;;  %956 = vmatmul.msk.f32.gmra.mxu1 %vm62_vm0, %v45_v62 }
 0x5c8   :  { %949 = vmatmul.msk.f32.gmra.mxu0 %vm62_vm0, %v46_v63  ;;  %957 = vmatmul.msk.f32.gmra.mxu1 %vm62_vm0, %v46_v63 }
 0x5d0   :  { %950 = vmatmul.msk.f32.gmra.mxu0 %vm62_vm0, %v47_v6  ;;  %958 = vmatmul.msk.f32.gmra.mxu1 %vm62_vm0, %v47_v6 }
 0x62b   :  { %v530_v2 = vpop.f32.mrf.mxu3  ;;  %v510_v13 = vpop.f32.mrf.mxu2 }
 0x62c   :  { %v534_v5 = vadd.f32 %v530_v2, %v155_v1  ;;  %v533_v14 = vadd.f32 %v510_v13, %v114_v9 }
 0x62e   :  { %1010 = vtanh.f32 %v534_v5  ;;  %v535_v16 = vmul.f32 0.5, %v533_v14  ;;  %v536_v12 = vmul.f32 0.5, %v534_v5 }
 0x630   :  { %1012 = vtanh.f32 %v535_v16 }
 0x634   :  { %v1011_v7 = vpop.eup %1010 }
 0x635   :  { %546 = vrot.lane.b32.xlu0 %v1011_v7, %s1132_s22  ;;  %v157_v28 = vpop.f32.mrf.mxu1  ;;  %v116_v38 = vpop.f32.mrf.mxu0 }
 0x636   :  { %v1013_v17 = vpop.eup %1012  ;;  %v158_v32 = vadd.f32 %v157_v28, %v1320_v27  ;;  %v117_v42 = vadd.f32 %v116_v38, %v1324_v33 }
 0x637   :  { %v539_v19 = vadd.f32 1.0, %v1013_v17 }
 0x639   :  { %v541_v22 = vmul.f32 0.5, %v539_v19 }
 0x63b   :  { %v544_v3 = vmul.f32 %v541_v22, %v460_v52 }
 0x63d   :  { %v160_v29 = vpop.f32.mrf.mxu1  ;;  %v119_v39 = vpop.f32.mrf.mxu0 }
 0x63e   :  { %v161_v1 = vadd.f32 %v160_v29, %v1320_v27  ;;  %v120_v9 = vadd.f32 %v119_v39, %v1324_v33 }
 0x645   :  { %v1467_v30 = vpop.f32.mrf.mxu1  ;;  %v1473_v40 = vpop.f32.mrf.mxu0 }
 0x646   :  { %v123_v29 = vadd.f32 %v1473_v40, %v1324_v33  ;;  %v201_v40 = vld [vmem:[%s1572_s4] sm:$0xff]  ;;  %s1134_s4 = smov [#allocation6]  }
 0x647   :  { %vm283_vm3 = vcmp.eq.s32.totalorder %v201_v40, 0  ;;  %vm384_vm4 = vcmp.eq.s32.totalorder %v201_v40, 6  ;;  %vm478_vm5 = vcmp.eq.s32.totalorder %v201_v40, 5  ;;  %vm290_vm6 = vcmp.eq.s32.totalorder %v201_v40, 7  ;;  %s905_s12 = sshll.u32 %s1134_s4, 4  ;;  %s906_s12 = int_to_ptr.vmem [resolvable:$true] %s905_s12 }
 0x648   :  { %vm565_vm7 = vcmp.eq.s32.totalorder %v201_v40, 3  ;;  %vm377_vm8 = vcmp.eq.s32.totalorder %v201_v40, 1  ;;  %vm471_vm9 = vcmp.eq.s32.totalorder %v201_v40, 2  ;;  %vm572_vm10 = vcmp.eq.s32.totalorder %v201_v40, 4 }
 0x64d   :  { %v1469_v31 = vpop.f32.mrf.mxu1  ;;  %v1475_v41 = vpop.f32.mrf.mxu0 }
 0x6a7   :  { %v547_v20 = vpop.permute.xlu0 %546 }
 0x6a8   :  { %v549_v23 = vmul.f32 %v547_v20, %v541_v22 }
 0x6aa   :  { %551 = vrot.lane.b32.xlu1 %v549_v23, %s1132_s22 }
 0x71c   :  { %v552_v4 = vpop.permute.xlu1 %551 }
 0x71d   :  { %v554_v10 = vadd.f32 %v552_v4, %v544_v3 }
 0x71f   :  { %1014 = vtanh.f32 %v554_v10 }
 0x720   :  { %1016 = vtanh.f32 %v536_v12 }
 0x725   :  { %v1015_v11 = vpop.eup %1014 }
 0x726   :  { %557 = vrot.lane.b32.xlu2 %v1015_v11, %s1132_s22  ;;  %v1017_v15 = vpop.eup %1016 }
 0x727   :  { %v540_v18 = vadd.f32 1.0, %v1017_v15  ;;  %v164_v15 = vadd.f32 %v1467_v30, %v1320_v27  ;;  %v1133_v30 = vmov 0  }
 0x728   :  { %983 = vset.pattern.permute.xlu2 %v1133_v30  ;;  %984 = vset.pattern.permute.xlu0 %v1133_v30 }
 0x729   :  { %v542_v21 = vmul.f32 0.5, %v540_v18  ;;  %985 = vset.pattern.permute.xlu1 %v1133_v30 }
 0x780   :  { %v558_v24 = vpop.permute.xlu2 %557 }
 0x781   :  { %v1457_v26 = vmul.f32 %v558_v24, %v542_v21 }
 0x783   :  { %562 = vst.msk [vmem:[#allocation6 + $0x18] sm:$0xff] %vm62_vm0, %v1457_v26  ;;  %965 = vmatmul.msk.f32.vlgmr.msrb.gmra.mxu0 %vm207_vm1, %v1457_v26  ;;  %966 = vmatmul.msk.f32.vlgmr.msrb.gmra.mxu1 %vm207_vm1, %v1457_v26 }
 0x784   :  { %564 = vst.msk [vmem:[#allocation6 + $0x20] sm:$0xff] %vm281_vm2, %v1457_v26 }
 0x800   :  { %v624_v35 = vpop.f32.mrf.mxu1  ;;  %v604_v43 = vpop.f32.mrf.mxu0 }
 0x801   :  { %v628_v36 = vadd.f32 %v624_v35, %v158_v32  ;;  %v627_v44 = vadd.f32 %v604_v43, %v117_v42 }
 0x803   :  { %1018 = vtanh.f32 %v628_v36  ;;  %v629_v45 = vmul.f32 0.5, %v627_v44  ;;  %v630_v56 = vmul.f32 0.5, %v628_v36 }
 0x805   :  { %1020 = vtanh.f32 %v629_v45 }
 0x809   :  { %v1019_v37 = vpop.eup %1018 }
 0x80a   :  { %640 = vrot.lane.b32.xlu0 %v1019_v37, %s1132_s22 }
 0x80b   :  { %v1021_v46 = vpop.eup %1020 }
 0x80c   :  { %v633_v47 = vadd.f32 1.0, %v1021_v46 }
 0x80e   :  { %v635_v48 = vmul.f32 0.5, %v633_v47  ;;  %v284_v47 = vsel %vm283_vm3, 1, %v1133_v30 }
 0x810   :  { %v638_v51 = vmul.f32 %v635_v48, %v554_v10 }
 0x87c   :  { %v641_v49 = vpop.permute.xlu0 %640 }
 0x87d   :  { %v643_v50 = vmul.f32 %v641_v49, %v635_v48 }
 0x87f   :  { %645 = vrot.lane.b32.xlu1 %v643_v50, %s1132_s22 }
 0x8f1   :  { %v646_v52 = vpop.permute.xlu1 %645 }
 0x8f2   :  { %v648_v53 = vadd.f32 %v646_v52, %v638_v51 }
 0x8f4   :  { %1022 = vtanh.f32 %v648_v53 }
 0x8f5   :  { %1024 = vtanh.f32 %v630_v56  ;;  %v479_v56 = vsel %vm478_vm5, 1, %v1133_v30 }
 0x8fa   :  { %v1023_v55 = vpop.eup %1022 }
 0x8fb   :  { %651 = vrot.lane.b32.xlu2 %v1023_v55, %s1132_s22  ;;  %v1025_v57 = vpop.eup %1024  ;;  %v385_v55 = vsel %vm384_vm4, 1, %v1133_v30 }
 0x8fc   :  { %v634_v58 = vadd.f32 1.0, %v1025_v57  ;;  %v167_v57 = vadd.f32 %v1469_v31, %v1320_v27 }
 0x8fe   :  { %v636_v59 = vmul.f32 0.5, %v634_v58 }
 0x955   :  { %v652_v60 = vpop.permute.xlu2 %651 }
 0x956   :  { %v1480_v0 = vmul.f32 %v652_v60, %v636_v59 }
 0x958   :  { %655 = vst.msk [vmem:[#allocation6 + $0x20] sm:$0xff] %vm62_vm0, %v1480_v0  ;;  %967 = vmatmul.msk.f32.vlgmr.msra.gmra.mxu2 %vm207_vm1, %v1480_v0  ;;  %968 = vmatmul.msk.f32.vlgmr.msra.gmra.mxu3 %vm207_vm1, %v1480_v0 }
 0x959   :  { %656 = vst.msk [vmem:[#allocation6 + $0x18] sm:$0xff] %vm281_vm2, %v1480_v0 }
 0x9db   :  { %v704_v2 = vpop.f32.mrf.mxu3  ;;  %v684_v8 = vpop.f32.mrf.mxu2 }
 0x9dc   :  { %v708_v5 = vadd.f32 %v704_v2, %v161_v1  ;;  %v707_v13 = vadd.f32 %v684_v8, %v120_v9  ;;  %v291_v1 = vsel %vm290_vm6, 1, %v1133_v30  ;;  %v566_v9 = vsel %vm565_vm7, 1, %v1133_v30 }
 0x9de   :  { %1026 = vtanh.f32 %v708_v5  ;;  %v709_v14 = vmul.f32 0.5, %v707_v13  ;;  %v710_v3 = vmul.f32 0.5, %v708_v5  ;;  %v126_v5 = vadd.f32 %v1475_v41, %v1324_v33 }
 0x9df   :  { %v573_v33 = vsel %vm572_vm10, 1, %v1133_v30 }
 0x9e0   :  { %1028 = vtanh.f32 %v709_v14 }
 0x9e4   :  { %v1027_v7 = vpop.eup %1026 }
 0x9e5   :  { %720 = vrot.lane.b32.xlu0 %v1027_v7, %s1132_s22 }
 0x9e6   :  { %v1029_v16 = vpop.eup %1028 }
 0x9e7   :  { %v713_v17 = vadd.f32 1.0, %v1029_v16 }
 0x9e9   :  { %v715_v19 = vmul.f32 0.5, %v713_v17  ;;  %v378_v17 = vsel %vm377_vm8, 1, %v1133_v30 }
 0x9eb   :  { %v718_v23 = vmul.f32 %v715_v19, %v648_v53 }
 0xa57   :  { %v721_v22 = vpop.permute.xlu0 %720 }
 0xa58   :  { %v723_v20 = vmul.f32 %v721_v22, %v715_v19  ;;  %v472_v19 = vsel %vm471_vm9, 1, %v1133_v30 }
 0xa5a   :  { %725 = vrot.lane.b32.xlu1 %v723_v20, %s1132_s22 }
 0xacc   :  { %v726_v25 = vpop.permute.xlu1 %725 }
 0xacd   :  { %v728_v62 = vadd.f32 %v726_v25, %v718_v23 }
 0xacf   :  { %1030 = vtanh.f32 %v728_v62 }
 0xad0   :  { %1032 = vtanh.f32 %v710_v3 }
 0xad5   :  { %v1031_v63 = vpop.eup %1030 }
 0xad6   :  { %731 = vrot.lane.b32.xlu2 %v1031_v63, %s1132_s22  ;;  %v1033_v4 = vpop.eup %1032 }
 0xad7   :  { %v714_v6 = vadd.f32 1.0, %v1033_v4 }
 0xad9   :  { %v716_v10 = vmul.f32 0.5, %v714_v6 }
 0xb30   :  { %v732_v11 = vpop.permute.xlu2 %731 }
 0xb31   :  { %v1495_v12 = vmul.f32 %v732_v11, %v716_v10 }
 0xb33   :  { %735 = vst.msk [vmem:[#allocation6 + $0x28] sm:$0xff] %vm62_vm0, %v1495_v12  ;;  %969 = vmatmul.msk.f32.vlgmr.msra.gmra.mxu0 %vm207_vm1, %v1495_v12  ;;  %970 = vmatmul.msk.f32.vlgmr.msra.gmra.mxu1 %vm207_vm1, %v1495_v12 }
 0xb34   :  { %736 = vst.msk [vmem:[#allocation6 + $0x10] sm:$0xff] %vm281_vm2, %v1495_v12 }
 0xbb0   :  { %v784_v18 = vpop.f32.mrf.mxu1  ;;  %v764_v28 = vpop.f32.mrf.mxu0 }
 0xbb1   :  { %v788_v21 = vadd.f32 %v784_v18, %v164_v15  ;;  %v787_v32 = vadd.f32 %v764_v28, %v123_v29 }
 0xbb3   :  { %1034 = vtanh.f32 %v788_v21  ;;  %v789_v35 = vmul.f32 0.5, %v787_v32  ;;  %v790_v48 = vmul.f32 0.5, %v788_v21 }
 0xbb5   :  { %1036 = vtanh.f32 %v789_v35 }
 0xbb9   :  { %v1035_v24 = vpop.eup %1034 }
 0xbba   :  { %800 = vrot.lane.b32.xlu0 %v1035_v24, %s1132_s22 }
 0xbbb   :  { %v1037_v36 = vpop.eup %1036 }
 0xbbc   :  { %v793_v37 = vadd.f32 1.0, %v1037_v36 }
 0xbbe   :  { %v795_v38 = vmul.f32 0.5, %v793_v37 }
 0xbc0   :  { %v798_v43 = vmul.f32 %v795_v38, %v728_v62 }
 0xc2c   :  { %v801_v39 = vpop.permute.xlu0 %800 }
 0xc2d   :  { %v803_v42 = vmul.f32 %v801_v39, %v795_v38 }
 0xc2f   :  { %805 = vrot.lane.b32.xlu1 %v803_v42, %s1132_s22 }
 0xca1   :  { %v806_v44 = vpop.permute.xlu1 %805 }
 0xca2   :  { %v808_v45 = vadd.f32 %v806_v44, %v798_v43 }
 0xca4   :  { %1038 = vtanh.f32 %v808_v45 }
 0xca5   :  { %1040 = vtanh.f32 %v790_v48 }
 0xcaa   :  { %v1039_v46 = vpop.eup %1038 }
 0xcab   :  { %811 = vrot.lane.b32.xlu2 %v1039_v46, %s1132_s22  ;;  %v1041_v49 = vpop.eup %1040 }
 0xcac   :  { %v794_v50 = vadd.f32 1.0, %v1041_v49 }
 0xcae   :  { %v796_v51 = vmul.f32 0.5, %v794_v50 }
 0xcb3   :  { %286 = vperm.xlu2 %983, %v284_v47  }
 0xcbb   :  { %387 = vperm.xlu2 %983, %v385_v55  }
 0xcc3   :  { %481 = vperm.xlu2 %983, %v479_v56  }
 0xd05   :  { %v812_v52 = vpop.permute.xlu2 %811 }
 0xd06   :  { %v1515_v53 = vmul.f32 %v812_v52, %v796_v51 }
 0xd08   :  { %815 = vst.msk [vmem:[#allocation6 + $0x30] sm:$0xff] %vm62_vm0, %v1515_v53  ;;  %971 = vmatmul.msk.f32.vlgmr.msrb.gmra.mxu2 %vm207_vm1, %v1515_v53  ;;  %972 = vmatmul.msk.f32.vlgmr.msrb.gmra.mxu3 %vm207_vm1, %v1515_v53 }
 0xd09   :  { %816 = vst.msk [vmem:[#allocation6 + $0x8] sm:$0xff] %vm281_vm2, %v1515_v53 }
 0xd0d   :  { %v287_v62 = vpop.permute.xlu2 %286 }
 0xd0e   :  { %vm288_vm13 = vcmp.eq.s32.totalorder %v287_v62, 1 }
 0xd0f   :  { %v289_v24 = vsel %vm288_vm13, %v1334_v54, 0.0 }
 0xd15   :  { %v388_v63 = vpop.permute.xlu2 %387 }
 0xd16   :  { %vm389_vm12 = vcmp.eq.s32.totalorder %v388_v63, 1 }
 0xd1d   :  { %v482_v11 = vpop.permute.xlu2 %481 }
 0xd1e   :  { %vm483_vm15 = vcmp.eq.s32.totalorder %v482_v11, 1 }
 0xd8b   :  { %v864_v58 = vpop.f32.mrf.mxu3  ;;  %v844_v2 = vpop.f32.mrf.mxu2 }
 0xd8c   :  { %v868_v59 = vadd.f32 %v864_v58, %v167_v57  ;;  %v867_v7 = vadd.f32 %v844_v2, %v126_v5 }
 0xd8e   :  { %1042 = vtanh.f32 %v868_v59  ;;  %v869_v8 = vmul.f32 0.5, %v867_v7  ;;  %v870_v6 = vmul.f32 0.5, %v868_v59 }
 0xd90   :  { %1044 = vtanh.f32 %v869_v8 }
 0xd94   :  { %v1043_v60 = vpop.eup %1042 }
 0xd95   :  { %880 = vrot.lane.b32.xlu0 %v1043_v60, %s1132_s22 }
 0xd96   :  { %v1045_v27 = vpop.eup %1044 }
 0xd97   :  { %v873_v31 = vadd.f32 1.0, %v1045_v27 }
 0xd99   :  { %v875_v13 = vmul.f32 0.5, %v873_v31 }
 0xd9b   :  { %v878_v41 = vmul.f32 %v875_v13, %v808_v45 }
 0xd9d   :  { %293 = vperm.xlu0 %984, %v291_v1  }
 0xda5   :  { %568 = vperm.xlu0 %984, %v566_v9  }
 0xe07   :  { %v881_v14 = vpop.permute.xlu0 %880 }
 0xe08   :  { %v883_v16 = vmul.f32 %v881_v14, %v875_v13 }
 0xe0a   :  { %885 = vrot.lane.b32.xlu1 %v883_v16, %s1132_s22 }
 0xe0f   :  { %v294_v4 = vpop.permute.xlu0 %293 }
 0xe10   :  { %vm295_vm11 = vcmp.eq.s32.totalorder %v294_v4, 1 }
 0xe11   :  { %v296_v10 = vsel %vm295_vm11, %v1334_v54, 0.0 }
 0xe12   :  { %380 = vperm.xlu1 %985, %v378_v17   ;;  %v390_v18 = vsel %vm389_vm12, %v1370_v34, %v296_v10 }
 0xe13   :  { %v484_v32 = vsel %vm483_vm15, %v1406_v61, %v390_v18 }
 0xe17   :  { %v569_v21 = vpop.permute.xlu0 %568 }
 0xe18   :  { %vm570_vm5 = vcmp.eq.s32.totalorder %v569_v21, 1 }
 0xe1a   :  { %474 = vperm.xlu1 %985, %v472_v19  }
 0xe22   :  { %575 = vperm.xlu1 %985, %v573_v33  }
 0xe7c   :  { %v886_v22 = vpop.permute.xlu1 %885 }
 0xe7d   :  { %v888_v20 = vadd.f32 %v886_v22, %v878_v41 }
 0xe7f   :  { %1046 = vtanh.f32 %v888_v20 }
 0xe80   :  { %1048 = vtanh.f32 %v870_v6 }
 0xe84   :  { %v381_v25 = vpop.permute.xlu1 %380 }
 0xe85   :  { %v1047_v23 = vpop.eup %1046  ;;  %vm382_vm14 = vcmp.eq.s32.totalorder %v381_v25, 1 }
 0xe86   :  { %891 = vrot.lane.b32.xlu2 %v1047_v23, %s1132_s22  ;;  %v383_v28 = vsel %vm382_vm14, %v1370_v34, %v289_v24  ;;  %v1049_v29 = vpop.eup %1048 }
 0xe87   :  { %v874_v38 = vadd.f32 1.0, %v1049_v29 }
 0xe89   :  { %v876_v42 = vmul.f32 0.5, %v874_v38 }
 0xe8c   :  { %v475_v3 = vpop.permute.xlu1 %474 }
 0xe8d   :  { %vm476_vm3 = vcmp.eq.s32.totalorder %v475_v3, 1 }
 0xe8e   :  { %v477_v35 = vsel %vm476_vm3, %v1406_v61, %v383_v28 }
 0xe8f   :  { %v571_v37 = vsel %vm570_vm5, %v1457_v26, %v477_v35 }
 0xe94   :  { %v576_v15 = vpop.permute.xlu1 %575 }
 0xe95   :  { %vm577_vm4 = vcmp.eq.s32.totalorder %v576_v15, 1 }
 0xe96   :  { %v578_v36 = vsel %vm577_vm4, %v1457_v26, %v484_v32  ;;  %v657_v39 = vsel %vm577_vm4, %v1480_v0, %v571_v37 }
 0xe97   :  { %v658_v54 = vsel %vm570_vm5, %v1480_v0, %v578_v36  ;;  %v737_v34 = vsel %vm483_vm15, %v1495_v12, %v657_v39 }
 0xe98   :  { %v738_v61 = vsel %vm476_vm3, %v1495_v12, %v658_v54  ;;  %v817_v0 = vsel %vm389_vm12, %v1515_v53, %v737_v34 }
 0xe99   :  { %v818_v43 = vsel %vm382_vm14, %v1515_v53, %v738_v61 }
 0xee0   :  { %v892_v30 = vpop.permute.xlu2 %891 }
 0xee1   :  { %v894_v26 = vmul.f32 %v892_v30, %v876_v42 }
 0xee3   :  { %895 = vst.msk [vmem:[#allocation6 + $0x38] sm:$0xff] %vm62_vm0, %v894_v26  ;;  %v897_v12 = vsel %vm295_vm11, %v894_v26, %v817_v0  ;;  %v898_v44 = vsel %vm288_vm13, %v894_v26, %v818_v43 }
 0xee4   :  { %896 = vst.msk [vmem:[#allocation6] sm:$0xff] %vm281_vm2, %v894_v26  ;;  %v899_v45 = vsel %vm62_vm0, %v897_v12, %v898_v44 }
 0xee5   :  { %913 = dma.vmem_to_hbm [thread:$0]  %s906_s12, 1024, %s908_s15, [#allocation5], %s1136_s5, %s1136_s5, %s1137_s6   ;;  %900 = vst.msk [vmem:[#allocation7] sm:$0xff] %vm207_vm1, %v899_v45 }
 0xee6   :  { %924 = dma.vmem_to_hbm [thread:$0]  %s920_s17, 128, %s922_s20, [#allocation8]  }
 0xee7   :  { %1124 = dma.done.wait [#allocation5], 1024  }
 0xee8   :  { %1125 = vsyncadd [#allocation5], 4294966272 }
 0xee9   :  { %1126 = dma.done.wait [#allocation8], 128  }
 0xeea   :  { %1127 = vsyncadd [#allocation8], 4294967168 }
 0xeeb   :  { %933 = vsyncpa [#allocation4], 1 }
 0xeec   :  { %934 = vsyncpa [#allocation5], 1 }
 0xeed   :  { %935 = vsyncpa [#allocation8], 1 }

</bundles_post_ra>
